<compile_context>
chip_gen: v6e
topology: v6e:2x2x1
jax: 0.10.0
libtpu: 0.0.40
codegen_flags: <defaults>
</compile_context>

<pallas_src>
import jax
import jax.numpy as jnp
import numpy as np
from jax.experimental import pallas as pl
from jax.experimental.pallas import tpu as pltpu


# ----------------------------------------------------------------------------
# Weight packing (wrapper-side, one-time glue).
#   _pack_dir_pair(w_f, w_b, H): (K, 4H) x 2 -> (2K, 8H) block matrix.
#     rows 0:K act on the forward-direction input, rows K:2K on the backward
#     one; column order per H-wide chunk is [i_f i_b f_f f_b g_f g_b o_f o_b],
#     so ONE matmul produces both directions' gates in the fused-cell layout.
# ----------------------------------------------------------------------------
def _pack_dir_pair(w_f, w_b, H):
    K = w_f.shape[0]
    z = jnp.zeros((K, H), w_f.dtype)
    cols = []
    for k in range(4):
        top = jnp.concatenate([w_f[:, k * H:(k + 1) * H], z], axis=1)  # fwd rows
        bot = jnp.concatenate([z, w_b[:, k * H:(k + 1) * H]], axis=1)  # bwd rows
        cols.append(jnp.concatenate([top, bot], axis=0))               # (2K, 2H)
    return jnp.concatenate(cols, axis=1)                               # (2K, 8H)


def _pack_bias_pair(b_f, b_b, H):
    return jnp.concatenate(
        [jnp.concatenate([b_f[:, k * H:(k + 1) * H],
                          b_b[:, k * H:(k + 1) * H]], axis=1)
         for k in range(4)],
        axis=1)                                                        # (1, 8H)


# ----------------------------------------------------------------------------
# Fused kernel: hoisted input projection + bidirectional recurrence.
#   x_ref   : (T*B, 2H)   rows are [x_t | x_{T-1-t}] per (t, b)
#   wih_ref : (2H, 8H)    packed input->gate weights (both directions)
#   whh_ref : (2H, 8H)    packed hidden->gate weights (both directions)
#   b_ref   : (1, 8H)     packed bias (b_ih + b_hh, both directions)
#   out_ref : (T, B, 2H)  fused concat of per-step fwd/bwd hiddens
#   h/c     : (2, B, H)   final states (dir 0 = fwd, dir 1 = bwd)
# ----------------------------------------------------------------------------
def _bilstm_kernel(x_ref, wih_ref, whh_ref, b_ref,
                   out_ref, h_out_ref, c_out_ref,
                   pre_buf, outf_buf, outb_buf):
    T, B, twoH = out_ref.shape
    H = twoH // 2

    # Hoisted, fully-parallel input projection for BOTH directions (one big
    # matmul, off the serial recurrence).  Result is already in the
    # interleaved gate layout the fused cell consumes.
    pre_buf[...] = (
        jnp.dot(x_ref[...], wih_ref[...], preferred_element_type=jnp.float32)
        + b_ref[...])

    # Recurrent weights loaded once, resident for the whole loop.
    whh = whh_ref[...]

    h_cat = jnp.zeros((B, twoH), jnp.float32)   # [h_fwd | h_bwd]
    c_cat = jnp.zeros((B, twoH), jnp.float32)   # [c_fwd | c_bwd]

    # Serial recurrence: one MXU push + one fused cell per step drives both
    # directions.  T is a small static constant -> fully unrolled.
    for t in range(T):
        gates = pre_buf[pl.ds(t * B, B), :] + jnp.dot(
            h_cat, whh, preferred_element_type=jnp.float32)        # (B, 8H)
        i = jax.nn.sigmoid(gates[:, 0 * twoH:1 * twoH])            # [i_f | i_b]
        f = jax.nn.sigmoid(gates[:, 1 * twoH:2 * twoH])            # [f_f | f_b]
        g = jnp.tanh(gates[:, 2 * twoH:3 * twoH])                  # [g_f | g_b]
        o = jax.nn.sigmoid(gates[:, 3 * twoH:4 * twoH])            # [o_f | o_b]
        c_cat = f * c_cat + i * g
        h_cat = o * jnp.tanh(c_cat)
        outf_buf[t] = h_cat[:, 0:H]               # fwd hidden for time t
        outb_buf[T - 1 - t] = h_cat[:, H:twoH]    # bwd hidden for index T-1-t

    # Fused output concat (single lane-dense block) + final states, written once.
    out_ref[:, :, 0:H] = outf_buf[...]
    out_ref[:, :, H:twoH] = outb_buf[...]
    h_out_ref[0] = h_cat[:, 0:H]
    h_out_ref[1] = h_cat[:, H:twoH]
    c_out_ref[0] = c_cat[:, 0:H]
    c_out_ref[1] = c_cat[:, H:twoH]


def _bilstm_fused(x_pair2d, w_ih_bd, w_hh_bd, b_bd, T, B, H):
    return pl.pallas_call(
        _bilstm_kernel,
        out_shape=(
            jax.ShapeDtypeStruct((T, B, 2 * H), jnp.float32),
            jax.ShapeDtypeStruct((2, B, H), jnp.float32),
            jax.ShapeDtypeStruct((2, B, H), jnp.float32),
        ),
        grid=(1,),
        in_specs=[
            pl.BlockSpec((T * B, 2 * H), lambda i: (0, 0)),
            pl.BlockSpec((2 * H, 8 * H), lambda i: (0, 0)),
            pl.BlockSpec((2 * H, 8 * H), lambda i: (0, 0)),
            pl.BlockSpec((1, 8 * H), lambda i: (0, 0)),
        ],
        out_specs=[
            pl.BlockSpec((T, B, 2 * H), lambda i: (0, 0, 0)),
            pl.BlockSpec((2, B, H), lambda i: (0, 0, 0)),
            pl.BlockSpec((2, B, H), lambda i: (0, 0, 0)),
        ],
        scratch_shapes=[
            pltpu.VMEM((T * B, 8 * H), jnp.float32),   # hoisted gate pre-acts
            pltpu.VMEM((T, B, H), jnp.float32),        # fwd per-step outputs
            pltpu.VMEM((T, B, H), jnp.float32),        # bwd per-step outputs
        ],
        compiler_params=pltpu.CompilerParams(
            dimension_semantics=("arbitrary",)),       # recurrence lives in-kernel
    )(x_pair2d, w_ih_bd, w_hh_bd, b_bd)


# ----------------------------------------------------------------------------
# EncoderRNN forward = embedding lookup (glue) + fused projection/recurrence.
# ----------------------------------------------------------------------------
def encoder_rnn_forward(tokens, emb_table, lstm_params):
    wih_f, whh_f, b_f, wih_b, whh_b, b_b = lstm_params
    T, B = tokens.shape
    H = emb_table.shape[1]

    # Embedding lookup (gather) stays as XLA glue.
    xt = jnp.take(emb_table, tokens, axis=0)            # (T, B, H)

    # Pair forward input x_t with backward input x_{T-1-t} so one matmul and
    # one fused cell drive both directions (x duplication ~8 KB: negligible).
    x_pair = jnp.concatenate([xt, xt[::-1]], axis=-1)    # (T, B, 2H)
    x_pair2d = x_pair.reshape(T * B, 2 * H)

    # One-time weight packing into the block / interleaved-gate layout.
    w_ih_bd = _pack_dir_pair(wih_f, wih_b, H)            # (2H, 8H)
    w_hh_bd = _pack_dir_pair(whh_f, whh_b, H)            # (2H, 8H)
    b_bd = _pack_bias_pair(b_f, b_b, H)                  # (1, 8H)

    output, hidden, c = _bilstm_fused(x_pair2d, w_ih_bd, w_hh_bd, b_bd, T, B, H)
    return output, hidden, c


# ----------------------------------------------------------------------------
# Pure-JAX reference (lax.scan), for correctness checking only.
# ----------------------------------------------------------------------------
def _ref_lstm_dir(x, wih, whh, b, H):
    B = x.shape[1]

    def step(carry, xt):
        h, c = carry
        gates = xt @ wih + h @ whh + b
        i = jax.nn.sigmoid(gates[:, 0:H])
        f = jax.nn.sigmoid(gates[:, H:2 * H])
        g = jnp.tanh(gates[:, 2 * H:3 * H])
        o = jax.nn.sigmoid(gates[:, 3 * H:4 * H])
        c_new = f * c + i * g
        h_new = o * jnp.tanh(c_new)
        return (h_new, c_new), h_new

    init = (jnp.zeros((B, H), jnp.float32), jnp.zeros((B, H), jnp.float32))
    (h_fin, c_fin), hs = jax.lax.scan(step, init, x)
    return hs, h_fin, c_fin


def encoder_rnn_reference(tokens, emb_table, lstm_params):
    wih_f, whh_f, b_f, wih_b, whh_b, b_b = lstm_params
    H = emb_table.shape[1]
    xt = jnp.take(emb_table, tokens, axis=0)
    out_f, hf, cf = _ref_lstm_dir(xt, wih_f, whh_f, b_f, H)
    out_b_rev, hb, cb = _ref_lstm_dir(xt[::-1], wih_b, whh_b, b_b, H)
    out_b = out_b_rev[::-1]
    output = jnp.concatenate([out_f, out_b], axis=-1)
    hidden = jnp.stack([hf, hb], axis=0)
    c = jnp.stack([cf, cb], axis=0)
    return output, hidden, c


if __name__ == "__main__":
    # Small shapes consistent with the module: vocab=16, hidden=32, seq=8, batch=4.
    INPUT_SIZE = 16   # vocabulary size
    HIDDEN = 32
    T, B = 8, 4

    key = jax.random.PRNGKey(0)
    keys = jax.random.split(key, 10)

    # nn.Embedding: N(0, 1); nn.LSTM: U(-1/sqrt(H), 1/sqrt(H)).
    bound = 1.0 / np.sqrt(HIDDEN)
    emb_table = jax.random.normal(keys[0], (INPUT_SIZE, HIDDEN), jnp.float32)

    def uni(k, shape):
        return jax.random.uniform(k, shape, jnp.float32, -bound, bound)

    # Stored transposed relative to PyTorch (so kernels compute x @ W).
    # Bias is b_ih + b_hh (independent draws), summed once at init.
    wih_f = uni(keys[1], (HIDDEN, 4 * HIDDEN))
    whh_f = uni(keys[2], (HIDDEN, 4 * HIDDEN))
    b_f = uni(keys[3], (1, 4 * HIDDEN)) + uni(keys[4], (1, 4 * HIDDEN))
    wih_b = uni(keys[5], (HIDDEN, 4 * HIDDEN))
    whh_b = uni(keys[6], (HIDDEN, 4 * HIDDEN))
    b_b = uni(keys[7], (1, 4 * HIDDEN)) + uni(keys[8], (1, 4 * HIDDEN))
    lstm_params = (wih_f, whh_f, b_f, wih_b, whh_b, b_b)

    tokens = jax.random.randint(keys[9], (T, B), 0, INPUT_SIZE, jnp.int32)

    fwd = jax.jit(encoder_rnn_forward)
    output, hidden, c = jax.block_until_ready(
        fwd(tokens, emb_table, lstm_params))

    ref_out, ref_hidden, ref_c = encoder_rnn_reference(tokens, emb_table, lstm_params)

    assert output.shape == (T, B, 2 * HIDDEN)
    assert hidden.shape == (2, B, HIDDEN)
    assert c.shape == (2, B, HIDDEN)
    np.testing.assert_allclose(np.asarray(output), np.asarray(ref_out), atol=1e-5, rtol=1e-5)
    np.testing.assert_allclose(np.asarray(hidden), np.asarray(ref_hidden), atol=1e-5, rtol=1e-5)
    np.testing.assert_allclose(np.asarray(c), np.asarray(ref_c), atol=1e-5, rtol=1e-5)

    print("KERNEL_OK")
</pallas_src>

<mosaic_0001>
module attributes {stable_mosaic.version = 11 : i64} {
  func.func @_bilstm_kernel(%arg0: i32, %arg1: memref<32x64xf32, #tpu.memory_space<vmem>>, %arg2: memref<64x256xf32, #tpu.memory_space<vmem>>, %arg3: memref<64x256xf32, #tpu.memory_space<vmem>>, %arg4: memref<1x256xf32, #tpu.memory_space<vmem>>, %arg5: memref<8x4x64xf32, #tpu.memory_space<vmem>>, %arg6: memref<2x4x32xf32, #tpu.memory_space<vmem>>, %arg7: memref<2x4x32xf32, #tpu.memory_space<vmem>>, %arg8: memref<32x256xf32, #tpu.memory_space<vmem>>, %arg9: memref<8x4x32xf32, #tpu.memory_space<vmem>>, %arg10: memref<8x4x32xf32, #tpu.memory_space<vmem>>) attributes {dimension_semantics = [#tpu.dimension_semantics<arbitrary>], iteration_bounds = array<i64: 1>, scalar_prefetch = 0 : i64, scratch_operands = 3 : i64, tpu.core_type = #tpu.core_type<tc>, window_params = [{pipeline_mode = #tpu.pipeline_mode<synchronous>, transform_indices = @transform_0, window_bounds = array<i64: 32, 64>}, {pipeline_mode = #tpu.pipeline_mode<synchronous>, transform_indices = @transform_1, window_bounds = array<i64: 64, 256>}, {pipeline_mode = #tpu.pipeline_mode<synchronous>, transform_indices = @transform_2, window_bounds = array<i64: 64, 256>}, {pipeline_mode = #tpu.pipeline_mode<synchronous>, transform_indices = @transform_3, window_bounds = array<i64: 1, 256>}, {pipeline_mode = #tpu.pipeline_mode<synchronous>, transform_indices = @transform_4, window_bounds = array<i64: 8, 4, 64>}, {pipeline_mode = #tpu.pipeline_mode<synchronous>, transform_indices = @transform_5, window_bounds = array<i64: 2, 4, 32>}, {pipeline_mode = #tpu.pipeline_mode<synchronous>, transform_indices = @transform_6, window_bounds = array<i64: 2, 4, 32>}]} {
    %c0 = arith.constant 0 : index
    %c0_0 = arith.constant 0 : index
    %0 = vector.load %arg1[%c0, %c0_0] : memref<32x64xf32, #tpu.memory_space<vmem>>, vector<32x64xf32>
    %c0_1 = arith.constant 0 : index
    %c0_2 = arith.constant 0 : index
    %1 = vector.load %arg2[%c0_1, %c0_2] : memref<64x256xf32, #tpu.memory_space<vmem>>, vector<64x256xf32>
    %cst = arith.constant dense<0.000000e+00> : vector<32x256xf32>
    %2 = tpu.matmul %0, %1, %cst {dimension_numbers = #tpu.dot_dimension_numbers<[1], [0], [0], [1], [0, 0, 1, 1], [], []>} : vector<32x64xf32>, vector<64x256xf32>, vector<32x256xf32> -> vector<32x256xf32>
    %c0_3 = arith.constant 0 : index
    %c0_4 = arith.constant 0 : index
    %3 = vector.load %arg4[%c0_3, %c0_4] : memref<1x256xf32, #tpu.memory_space<vmem>>, vector<1x256xf32>
    %4 = vector.broadcast %3 : vector<1x256xf32> to vector<32x256xf32>
    %5 = arith.addf %2, %4 : vector<32x256xf32>
    %c0_5 = arith.constant 0 : index
    %c0_6 = arith.constant 0 : index
    %6 = vector.load %arg8[%c0_5, %c0_6] : memref<32x256xf32, #tpu.memory_space<vmem>>, vector<32x256xf32>
    tpu.vector_store %arg8[%c0_5, %c0_6], %5 {strides = array<i32>} : memref<32x256xf32, #tpu.memory_space<vmem>>, vector<32x256xf32>,
    %c0_7 = arith.constant 0 : index
    %c0_8 = arith.constant 0 : index
    %7 = vector.load %arg3[%c0_7, %c0_8] : memref<64x256xf32, #tpu.memory_space<vmem>>, vector<64x256xf32>
    %cst_9 = arith.constant 0.000000e+00 : f32
    %8 = vector.broadcast %cst_9 : f32 to vector<4x64xf32>
    %cst_10 = arith.constant 0.000000e+00 : f32
    %9 = vector.broadcast %cst_10 : f32 to vector<4x64xf32>
    %c0_11 = arith.constant 0 : index
    %c0_12 = arith.constant 0 : index
    %10 = vector.load %arg8[%c0_11, %c0_12] : memref<32x256xf32, #tpu.memory_space<vmem>>, vector<4x256xf32>
    %cst_13 = arith.constant dense<0.000000e+00> : vector<4x256xf32>
    %11 = tpu.matmul %8, %7, %cst_13 {dimension_numbers = #tpu.dot_dimension_numbers<[1], [0], [0], [1], [0, 0, 1, 1], [], []>} : vector<4x64xf32>, vector<64x256xf32>, vector<4x256xf32> -> vector<4x256xf32>
    %12 = arith.addf %10, %11 : vector<4x256xf32>
    %13 = vector.extract_strided_slice %12 {offsets = [0, 0], sizes = [4, 64], strides = [1, 1]} : vector<4x256xf32> to vector<4x64xf32>
    %14 = arith.negf %13 : vector<4x64xf32>
    %15 = math.exp %14 : vector<4x64xf32>
    %cst_14 = arith.constant 1.000000e+00 : f32
    %16 = vector.broadcast %cst_14 : f32 to vector<4x64xf32>
    %17 = arith.addf %16, %15 : vector<4x64xf32>
    %18 = arith.divf %16, %17 : vector<4x64xf32>
    %19 = vector.extract_strided_slice %12 {offsets = [0, 64], sizes = [4, 64], strides = [1, 1]} : vector<4x256xf32> to vector<4x64xf32>
    %20 = arith.negf %19 : vector<4x64xf32>
    %21 = math.exp %20 : vector<4x64xf32>
    %cst_15 = arith.constant 1.000000e+00 : f32
    %22 = vector.broadcast %cst_15 : f32 to vector<4x64xf32>
    %23 = arith.addf %22, %21 : vector<4x64xf32>
    %24 = arith.divf %22, %23 : vector<4x64xf32>
    %25 = vector.extract_strided_slice %12 {offsets = [0, 128], sizes = [4, 64], strides = [1, 1]} : vector<4x256xf32> to vector<4x64xf32>
    %26 = math.tanh %25 : vector<4x64xf32>
    %27 = vector.extract_strided_slice %12 {offsets = [0, 192], sizes = [4, 64], strides = [1, 1]} : vector<4x256xf32> to vector<4x64xf32>
    %28 = arith.negf %27 : vector<4x64xf32>
    %29 = math.exp %28 : vector<4x64xf32>
    %cst_16 = arith.constant 1.000000e+00 : f32
    %30 = vector.broadcast %cst_16 : f32 to vector<4x64xf32>
    %31 = arith.addf %30, %29 : vector<4x64xf32>
    %32 = arith.divf %30, %31 : vector<4x64xf32>
    %33 = arith.mulf %24, %9 : vector<4x64xf32>
    %34 = arith.mulf %18, %26 : vector<4x64xf32>
    %35 = arith.addf %33, %34 : vector<4x64xf32>
    %36 = math.tanh %35 : vector<4x64xf32>
    %37 = arith.mulf %32, %36 : vector<4x64xf32>
    %38 = vector.extract_strided_slice %37 {offsets = [0, 0], sizes = [4, 32], strides = [1, 1]} : vector<4x64xf32> to vector<4x32xf32>
    %c0_17 = arith.constant 0 : index
    %c0_18 = arith.constant 0 : index
    %c0_19 = arith.constant 0 : index
    %39 = vector.load %arg9[%c0_17, %c0_18, %c0_19] : memref<8x4x32xf32, #tpu.memory_space<vmem>>, vector<1x4x32xf32>
    %40 = vector.shape_cast %39 : vector<1x4x32xf32> to vector<4x32xf32>
    %41 = vector.shape_cast %38 : vector<4x32xf32> to vector<1x4x32xf32>
    tpu.vector_store %arg9[%c0_17, %c0_18, %c0_19], %41 {strides = array<i32>} : memref<8x4x32xf32, #tpu.memory_space<vmem>>, vector<1x4x32xf32>,
    %42 = vector.extract_strided_slice %37 {offsets = [0, 32], sizes = [4, 32], strides = [1, 1]} : vector<4x64xf32> to vector<4x32xf32>
    %c7 = arith.constant 7 : index
    %c0_20 = arith.constant 0 : index
    %c0_21 = arith.constant 0 : index
    %43 = vector.load %arg10[%c7, %c0_20, %c0_21] : memref<8x4x32xf32, #tpu.memory_space<vmem>>, vector<1x4x32xf32>
    %44 = vector.shape_cast %43 : vector<1x4x32xf32> to vector<4x32xf32>
    %45 = vector.shape_cast %42 : vector<4x32xf32> to vector<1x4x32xf32>
    tpu.vector_store %arg10[%c7, %c0_20, %c0_21], %45 {strides = array<i32>} : memref<8x4x32xf32, #tpu.memory_space<vmem>>, vector<1x4x32xf32>,
    %c4 = arith.constant 4 : index
    %c0_22 = arith.constant 0 : index
    %46 = vector.load %arg8[%c4, %c0_22] : memref<32x256xf32, #tpu.memory_space<vmem>>, vector<4x256xf32>
    %cst_23 = arith.constant dense<0.000000e+00> : vector<4x256xf32>
    %47 = tpu.matmul %37, %7, %cst_23 {dimension_numbers = #tpu.dot_dimension_numbers<[1], [0], [0], [1], [0, 0, 1, 1], [], []>} : vector<4x64xf32>, vector<64x256xf32>, vector<4x256xf32> -> vector<4x256xf32>
    %48 = arith.addf %46, %47 : vector<4x256xf32>
    %49 = vector.extract_strided_slice %48 {offsets = [0, 0], sizes = [4, 64], strides = [1, 1]} : vector<4x256xf32> to vector<4x64xf32>
    %50 = arith.negf %49 : vector<4x64xf32>
    %51 = math.exp %50 : vector<4x64xf32>
    %cst_24 = arith.constant 1.000000e+00 : f32
    %52 = vector.broadcast %cst_24 : f32 to vector<4x64xf32>
    %53 = arith.addf %52, %51 : vector<4x64xf32>
    %54 = arith.divf %52, %53 : vector<4x64xf32>
    %55 = vector.extract_strided_slice %48 {offsets = [0, 64], sizes = [4, 64], strides = [1, 1]} : vector<4x256xf32> to vector<4x64xf32>
    %56 = arith.negf %55 : vector<4x64xf32>
    %57 = math.exp %56 : vector<4x64xf32>
    %cst_25 = arith.constant 1.000000e+00 : f32
    %58 = vector.broadcast %cst_25 : f32 to vector<4x64xf32>
    %59 = arith.addf %58, %57 : vector<4x64xf32>
    %60 = arith.divf %58, %59 : vector<4x64xf32>
    %61 = vector.extract_strided_slice %48 {offsets = [0, 128], sizes = [4, 64], strides = [1, 1]} : vector<4x256xf32> to vector<4x64xf32>
    %62 = math.tanh %61 : vector<4x64xf32>
    %63 = vector.extract_strided_slice %48 {offsets = [0, 192], sizes = [4, 64], strides = [1, 1]} : vector<4x256xf32> to vector<4x64xf32>
    %64 = arith.negf %63 : vector<4x64xf32>
    %65 = math.exp %64 : vector<4x64xf32>
    %cst_26 = arith.constant 1.000000e+00 : f32
    %66 = vector.broadcast %cst_26 : f32 to vector<4x64xf32>
    %67 = arith.addf %66, %65 : vector<4x64xf32>
    %68 = arith.divf %66, %67 : vector<4x64xf32>
    %69 = arith.mulf %60, %35 : vector<4x64xf32>
    %70 = arith.mulf %54, %62 : vector<4x64xf32>
    %71 = arith.addf %69, %70 : vector<4x64xf32>
    %72 = math.tanh %71 : vector<4x64xf32>
    %73 = arith.mulf %68, %72 : vector<4x64xf32>
    %74 = vector.extract_strided_slice %73 {offsets = [0, 0], sizes = [4, 32], strides = [1, 1]} : vector<4x64xf32> to vector<4x32xf32>
    %c1 = arith.constant 1 : index
    %c0_27 = arith.constant 0 : index
    %c0_28 = arith.constant 0 : index
    %75 = vector.load %arg9[%c1, %c0_27, %c0_28] : memref<8x4x32xf32, #tpu.memory_space<vmem>>, vector<1x4x32xf32>
    %76 = vector.shape_cast %75 : vector<1x4x32xf32> to vector<4x32xf32>
    %77 = vector.shape_cast %74 : vector<4x32xf32> to vector<1x4x32xf32>
    tpu.vector_store %arg9[%c1, %c0_27, %c0_28], %77 {strides = array<i32>} : memref<8x4x32xf32, #tpu.memory_space<vmem>>, vector<1x4x32xf32>,
    %78 = vector.extract_strided_slice %73 {offsets = [0, 32], sizes = [4, 32], strides = [1, 1]} : vector<4x64xf32> to vector<4x32xf32>
    %c6 = arith.constant 6 : index
    %c0_29 = arith.constant 0 : index
    %c0_30 = arith.constant 0 : index
    %79 = vector.load %arg10[%c6, %c0_29, %c0_30] : memref<8x4x32xf32, #tpu.memory_space<vmem>>, vector<1x4x32xf32>
    %80 = vector.shape_cast %79 : vector<1x4x32xf32> to vector<4x32xf32>
    %81 = vector.shape_cast %78 : vector<4x32xf32> to vector<1x4x32xf32>
    tpu.vector_store %arg10[%c6, %c0_29, %c0_30], %81 {strides = array<i32>} : memref<8x4x32xf32, #tpu.memory_space<vmem>>, vector<1x4x32xf32>,
    %c8 = arith.constant 8 : index
    %c0_31 = arith.constant 0 : index
    %82 = vector.load %arg8[%c8, %c0_31] : memref<32x256xf32, #tpu.memory_space<vmem>>, vector<4x256xf32>
    %cst_32 = arith.constant dense<0.000000e+00> : vector<4x256xf32>
    %83 = tpu.matmul %73, %7, %cst_32 {dimension_numbers = #tpu.dot_dimension_numbers<[1], [0], [0], [1], [0, 0, 1, 1], [], []>} : vector<4x64xf32>, vector<64x256xf32>, vector<4x256xf32> -> vector<4x256xf32>
    %84 = arith.addf %82, %83 : vector<4x256xf32>
    %85 = vector.extract_strided_slice %84 {offsets = [0, 0], sizes = [4, 64], strides = [1, 1]} : vector<4x256xf32> to vector<4x64xf32>
    %86 = arith.negf %85 : vector<4x64xf32>
    %87 = math.exp %86 : vector<4x64xf32>
    %cst_33 = arith.constant 1.000000e+00 : f32
    %88 = vector.broadcast %cst_33 : f32 to vector<4x64xf32>
    %89 = arith.addf %88, %87 : vector<4x64xf32>
    %90 = arith.divf %88, %89 : vector<4x64xf32>
    %91 = vector.extract_strided_slice %84 {offsets = [0, 64], sizes = [4, 64], strides = [1, 1]} : vector<4x256xf32> to vector<4x64xf32>
    %92 = arith.negf %91 : vector<4x64xf32>
    %93 = math.exp %92 : vector<4x64xf32>
    %cst_34 = arith.constant 1.000000e+00 : f32
    %94 = vector.broadcast %cst_34 : f32 to vector<4x64xf32>
    %95 = arith.addf %94, %93 : vector<4x64xf32>
    %96 = arith.divf %94, %95 : vector<4x64xf32>
    %97 = vector.extract_strided_slice %84 {offsets = [0, 128], sizes = [4, 64], strides = [1, 1]} : vector<4x256xf32> to vector<4x64xf32>
    %98 = math.tanh %97 : vector<4x64xf32>
    %99 = vector.extract_strided_slice %84 {offsets = [0, 192], sizes = [4, 64], strides = [1, 1]} : vector<4x256xf32> to vector<4x64xf32>
    %100 = arith.negf %99 : vector<4x64xf32>
    %101 = math.exp %100 : vector<4x64xf32>
    %cst_35 = arith.constant 1.000000e+00 : f32
    %102 = vector.broadcast %cst_35 : f32 to vector<4x64xf32>
    %103 = arith.addf %102, %101 : vector<4x64xf32>
    %104 = arith.divf %102, %103 : vector<4x64xf32>
    %105 = arith.mulf %96, %71 : vector<4x64xf32>
    %106 = arith.mulf %90, %98 : vector<4x64xf32>
    %107 = arith.addf %105, %106 : vector<4x64xf32>
    %108 = math.tanh %107 : vector<4x64xf32>
    %109 = arith.mulf %104, %108 : vector<4x64xf32>
    %110 = vector.extract_strided_slice %109 {offsets = [0, 0], sizes = [4, 32], strides = [1, 1]} : vector<4x64xf32> to vector<4x32xf32>
    %c2 = arith.constant 2 : index
    %c0_36 = arith.constant 0 : index
    %c0_37 = arith.constant 0 : index
    %111 = vector.load %arg9[%c2, %c0_36, %c0_37] : memref<8x4x32xf32, #tpu.memory_space<vmem>>, vector<1x4x32xf32>
    %112 = vector.shape_cast %111 : vector<1x4x32xf32> to vector<4x32xf32>
    %113 = vector.shape_cast %110 : vector<4x32xf32> to vector<1x4x32xf32>
    tpu.vector_store %arg9[%c2, %c0_36, %c0_37], %113 {strides = array<i32>} : memref<8x4x32xf32, #tpu.memory_space<vmem>>, vector<1x4x32xf32>,
    %114 = vector.extract_strided_slice %109 {offsets = [0, 32], sizes = [4, 32], strides = [1, 1]} : vector<4x64xf32> to vector<4x32xf32>
    %c5 = arith.constant 5 : index
    %c0_38 = arith.constant 0 : index
    %c0_39 = arith.constant 0 : index
    %115 = vector.load %arg10[%c5, %c0_38, %c0_39] : memref<8x4x32xf32, #tpu.memory_space<vmem>>, vector<1x4x32xf32>
    %116 = vector.shape_cast %115 : vector<1x4x32xf32> to vector<4x32xf32>
    %117 = vector.shape_cast %114 : vector<4x32xf32> to vector<1x4x32xf32>
    tpu.vector_store %arg10[%c5, %c0_38, %c0_39], %117 {strides = array<i32>} : memref<8x4x32xf32, #tpu.memory_space<vmem>>, vector<1x4x32xf32>,
    %c12 = arith.constant 12 : index
    %c0_40 = arith.constant 0 : index
    %118 = vector.load %arg8[%c12, %c0_40] : memref<32x256xf32, #tpu.memory_space<vmem>>, vector<4x256xf32>
    %cst_41 = arith.constant dense<0.000000e+00> : vector<4x256xf32>
    %119 = tpu.matmul %109, %7, %cst_41 {dimension_numbers = #tpu.dot_dimension_numbers<[1], [0], [0], [1], [0, 0, 1, 1], [], []>} : vector<4x64xf32>, vector<64x256xf32>, vector<4x256xf32> -> vector<4x256xf32>
    %120 = arith.addf %118, %119 : vector<4x256xf32>
    %121 = vector.extract_strided_slice %120 {offsets = [0, 0], sizes = [4, 64], strides = [1, 1]} : vector<4x256xf32> to vector<4x64xf32>
    %122 = arith.negf %121 : vector<4x64xf32>
    %123 = math.exp %122 : vector<4x64xf32>
    %cst_42 = arith.constant 1.000000e+00 : f32
    %124 = vector.broadcast %cst_42 : f32 to vector<4x64xf32>
    %125 = arith.addf %124, %123 : vector<4x64xf32>
    %126 = arith.divf %124, %125 : vector<4x64xf32>
    %127 = vector.extract_strided_slice %120 {offsets = [0, 64], sizes = [4, 64], strides = [1, 1]} : vector<4x256xf32> to vector<4x64xf32>
    %128 = arith.negf %127 : vector<4x64xf32>
    %129 = math.exp %128 : vector<4x64xf32>
    %cst_43 = arith.constant 1.000000e+00 : f32
    %130 = vector.broadcast %cst_43 : f32 to vector<4x64xf32>
    %131 = arith.addf %130, %129 : vector<4x64xf32>
    %132 = arith.divf %130, %131 : vector<4x64xf32>
    %133 = vector.extract_strided_slice %120 {offsets = [0, 128], sizes = [4, 64], strides = [1, 1]} : vector<4x256xf32> to vector<4x64xf32>
    %134 = math.tanh %133 : vector<4x64xf32>
    %135 = vector.extract_strided_slice %120 {offsets = [0, 192], sizes = [4, 64], strides = [1, 1]} : vector<4x256xf32> to vector<4x64xf32>
    %136 = arith.negf %135 : vector<4x64xf32>
    %137 = math.exp %136 : vector<4x64xf32>
    %cst_44 = arith.constant 1.000000e+00 : f32
    %138 = vector.broadcast %cst_44 : f32 to vector<4x64xf32>
    %139 = arith.addf %138, %137 : vector<4x64xf32>
    %140 = arith.divf %138, %139 : vector<4x64xf32>
    %141 = arith.mulf %132, %107 : vector<4x64xf32>
    %142 = arith.mulf %126, %134 : vector<4x64xf32>
    %143 = arith.addf %141, %142 : vector<4x64xf32>
    %144 = math.tanh %143 : vector<4x64xf32>
    %145 = arith.mulf %140, %144 : vector<4x64xf32>
    %146 = vector.extract_strided_slice %145 {offsets = [0, 0], sizes = [4, 32], strides = [1, 1]} : vector<4x64xf32> to vector<4x32xf32>
    %c3 = arith.constant 3 : index
    %c0_45 = arith.constant 0 : index
    %c0_46 = arith.constant 0 : index
    %147 = vector.load %arg9[%c3, %c0_45, %c0_46] : memref<8x4x32xf32, #tpu.memory_space<vmem>>, vector<1x4x32xf32>
    %148 = vector.shape_cast %147 : vector<1x4x32xf32> to vector<4x32xf32>
    %149 = vector.shape_cast %146 : vector<4x32xf32> to vector<1x4x32xf32>
    tpu.vector_store %arg9[%c3, %c0_45, %c0_46], %149 {strides = array<i32>} : memref<8x4x32xf32, #tpu.memory_space<vmem>>, vector<1x4x32xf32>,
    %150 = vector.extract_strided_slice %145 {offsets = [0, 32], sizes = [4, 32], strides = [1, 1]} : vector<4x64xf32> to vector<4x32xf32>
    %c4_47 = arith.constant 4 : index
    %c0_48 = arith.constant 0 : index
    %c0_49 = arith.constant 0 : index
    %151 = vector.load %arg10[%c4_47, %c0_48, %c0_49] : memref<8x4x32xf32, #tpu.memory_space<vmem>>, vector<1x4x32xf32>
    %152 = vector.shape_cast %151 : vector<1x4x32xf32> to vector<4x32xf32>
    %153 = vector.shape_cast %150 : vector<4x32xf32> to vector<1x4x32xf32>
    tpu.vector_store %arg10[%c4_47, %c0_48, %c0_49], %153 {strides = array<i32>} : memref<8x4x32xf32, #tpu.memory_space<vmem>>, vector<1x4x32xf32>,
    %c16 = arith.constant 16 : index
    %c0_50 = arith.constant 0 : index
    %154 = vector.load %arg8[%c16, %c0_50] : memref<32x256xf32, #tpu.memory_space<vmem>>, vector<4x256xf32>
    %cst_51 = arith.constant dense<0.000000e+00> : vector<4x256xf32>
    %155 = tpu.matmul %145, %7, %cst_51 {dimension_numbers = #tpu.dot_dimension_numbers<[1], [0], [0], [1], [0, 0, 1, 1], [], []>} : vector<4x64xf32>, vector<64x256xf32>, vector<4x256xf32> -> vector<4x256xf32>
    %156 = arith.addf %154, %155 : vector<4x256xf32>
    %157 = vector.extract_strided_slice %156 {offsets = [0, 0], sizes = [4, 64], strides = [1, 1]} : vector<4x256xf32> to vector<4x64xf32>
    %158 = arith.negf %157 : vector<4x64xf32>
    %159 = math.exp %158 : vector<4x64xf32>
    %cst_52 = arith.constant 1.000000e+00 : f32
    %160 = vector.broadcast %cst_52 : f32 to vector<4x64xf32>
    %161 = arith.addf %160, %159 : vector<4x64xf32>
    %162 = arith.divf %160, %161 : vector<4x64xf32>
    %163 = vector.extract_strided_slice %156 {offsets = [0, 64], sizes = [4, 64], strides = [1, 1]} : vector<4x256xf32> to vector<4x64xf32>
    %164 = arith.negf %163 : vector<4x64xf32>
    %165 = math.exp %164 : vector<4x64xf32>
    %cst_53 = arith.constant 1.000000e+00 : f32
    %166 = vector.broadcast %cst_53 : f32 to vector<4x64xf32>
    %167 = arith.addf %166, %165 : vector<4x64xf32>
    %168 = arith.divf %166, %167 : vector<4x64xf32>
    %169 = vector.extract_strided_slice %156 {offsets = [0, 128], sizes = [4, 64], strides = [1, 1]} : vector<4x256xf32> to vector<4x64xf32>
    %170 = math.tanh %169 : vector<4x64xf32>
    %171 = vector.extract_strided_slice %156 {offsets = [0, 192], sizes = [4, 64], strides = [1, 1]} : vector<4x256xf32> to vector<4x64xf32>
    %172 = arith.negf %171 : vector<4x64xf32>
    %173 = math.exp %172 : vector<4x64xf32>
    %cst_54 = arith.constant 1.000000e+00 : f32
    %174 = vector.broadcast %cst_54 : f32 to vector<4x64xf32>
    %175 = arith.addf %174, %173 : vector<4x64xf32>
    %176 = arith.divf %174, %175 : vector<4x64xf32>
    %177 = arith.mulf %168, %143 : vector<4x64xf32>
    %178 = arith.mulf %162, %170 : vector<4x64xf32>
    %179 = arith.addf %177, %178 : vector<4x64xf32>
    %180 = math.tanh %179 : vector<4x64xf32>
    %181 = arith.mulf %176, %180 : vector<4x64xf32>
    %182 = vector.extract_strided_slice %181 {offsets = [0, 0], sizes = [4, 32], strides = [1, 1]} : vector<4x64xf32> to vector<4x32xf32>
    %c4_55 = arith.constant 4 : index
    %c0_56 = arith.constant 0 : index
    %c0_57 = arith.constant 0 : index
    %183 = vector.load %arg9[%c4_55, %c0_56, %c0_57] : memref<8x4x32xf32, #tpu.memory_space<vmem>>, vector<1x4x32xf32>
    %184 = vector.shape_cast %183 : vector<1x4x32xf32> to vector<4x32xf32>
    %185 = vector.shape_cast %182 : vector<4x32xf32> to vector<1x4x32xf32>
    tpu.vector_store %arg9[%c4_55, %c0_56, %c0_57], %185 {strides = array<i32>} : memref<8x4x32xf32, #tpu.memory_space<vmem>>, vector<1x4x32xf32>,
    %186 = vector.extract_strided_slice %181 {offsets = [0, 32], sizes = [4, 32], strides = [1, 1]} : vector<4x64xf32> to vector<4x32xf32>
    %c3_58 = arith.constant 3 : index
    %c0_59 = arith.constant 0 : index
    %c0_60 = arith.constant 0 : index
    %187 = vector.load %arg10[%c3_58, %c0_59, %c0_60] : memref<8x4x32xf32, #tpu.memory_space<vmem>>, vector<1x4x32xf32>
    %188 = vector.shape_cast %187 : vector<1x4x32xf32> to vector<4x32xf32>
    %189 = vector.shape_cast %186 : vector<4x32xf32> to vector<1x4x32xf32>
    tpu.vector_store %arg10[%c3_58, %c0_59, %c0_60], %189 {strides = array<i32>} : memref<8x4x32xf32, #tpu.memory_space<vmem>>, vector<1x4x32xf32>,
    %c20 = arith.constant 20 : index
    %c0_61 = arith.constant 0 : index
    %190 = vector.load %arg8[%c20, %c0_61] : memref<32x256xf32, #tpu.memory_space<vmem>>, vector<4x256xf32>
    %cst_62 = arith.constant dense<0.000000e+00> : vector<4x256xf32>
    %191 = tpu.matmul %181, %7, %cst_62 {dimension_numbers = #tpu.dot_dimension_numbers<[1], [0], [0], [1], [0, 0, 1, 1], [], []>} : vector<4x64xf32>, vector<64x256xf32>, vector<4x256xf32> -> vector<4x256xf32>
    %192 = arith.addf %190, %191 : vector<4x256xf32>
    %193 = vector.extract_strided_slice %192 {offsets = [0, 0], sizes = [4, 64], strides = [1, 1]} : vector<4x256xf32> to vector<4x64xf32>
    %194 = arith.negf %193 : vector<4x64xf32>
    %195 = math.exp %194 : vector<4x64xf32>
    %cst_63 = arith.constant 1.000000e+00 : f32
    %196 = vector.broadcast %cst_63 : f32 to vector<4x64xf32>
    %197 = arith.addf %196, %195 : vector<4x64xf32>
    %198 = arith.divf %196, %197 : vector<4x64xf32>
    %199 = vector.extract_strided_slice %192 {offsets = [0, 64], sizes = [4, 64], strides = [1, 1]} : vector<4x256xf32> to vector<4x64xf32>
    %200 = arith.negf %199 : vector<4x64xf32>
    %201 = math.exp %200 : vector<4x64xf32>
    %cst_64 = arith.constant 1.000000e+00 : f32
    %202 = vector.broadcast %cst_64 : f32 to vector<4x64xf32>
    %203 = arith.addf %202, %201 : vector<4x64xf32>
    %204 = arith.divf %202, %203 : vector<4x64xf32>
    %205 = vector.extract_strided_slice %192 {offsets = [0, 128], sizes = [4, 64], strides = [1, 1]} : vector<4x256xf32> to vector<4x64xf32>
    %206 = math.tanh %205 : vector<4x64xf32>
    %207 = vector.extract_strided_slice %192 {offsets = [0, 192], sizes = [4, 64], strides = [1, 1]} : vector<4x256xf32> to vector<4x64xf32>
    %208 = arith.negf %207 : vector<4x64xf32>
    %209 = math.exp %208 : vector<4x64xf32>
    %cst_65 = arith.constant 1.000000e+00 : f32
    %210 = vector.broadcast %cst_65 : f32 to vector<4x64xf32>
    %211 = arith.addf %210, %209 : vector<4x64xf32>
    %212 = arith.divf %210, %211 : vector<4x64xf32>
    %213 = arith.mulf %204, %179 : vector<4x64xf32>
    %214 = arith.mulf %198, %206 : vector<4x64xf32>
    %215 = arith.addf %213, %214 : vector<4x64xf32>
    %216 = math.tanh %215 : vector<4x64xf32>
    %217 = arith.mulf %212, %216 : vector<4x64xf32>
    %218 = vector.extract_strided_slice %217 {offsets = [0, 0], sizes = [4, 32], strides = [1, 1]} : vector<4x64xf32> to vector<4x32xf32>
    %c5_66 = arith.constant 5 : index
    %c0_67 = arith.constant 0 : index
    %c0_68 = arith.constant 0 : index
    %219 = vector.load %arg9[%c5_66, %c0_67, %c0_68] : memref<8x4x32xf32, #tpu.memory_space<vmem>>, vector<1x4x32xf32>
    %220 = vector.shape_cast %219 : vector<1x4x32xf32> to vector<4x32xf32>
    %221 = vector.shape_cast %218 : vector<4x32xf32> to vector<1x4x32xf32>
    tpu.vector_store %arg9[%c5_66, %c0_67, %c0_68], %221 {strides = array<i32>} : memref<8x4x32xf32, #tpu.memory_space<vmem>>, vector<1x4x32xf32>,
    %222 = vector.extract_strided_slice %217 {offsets = [0, 32], sizes = [4, 32], strides = [1, 1]} : vector<4x64xf32> to vector<4x32xf32>
    %c2_69 = arith.constant 2 : index
    %c0_70 = arith.constant 0 : index
    %c0_71 = arith.constant 0 : index
    %223 = vector.load %arg10[%c2_69, %c0_70, %c0_71] : memref<8x4x32xf32, #tpu.memory_space<vmem>>, vector<1x4x32xf32>
    %224 = vector.shape_cast %223 : vector<1x4x32xf32> to vector<4x32xf32>
    %225 = vector.shape_cast %222 : vector<4x32xf32> to vector<1x4x32xf32>
    tpu.vector_store %arg10[%c2_69, %c0_70, %c0_71], %225 {strides = array<i32>} : memref<8x4x32xf32, #tpu.memory_space<vmem>>, vector<1x4x32xf32>,
    %c24 = arith.constant 24 : index
    %c0_72 = arith.constant 0 : index
    %226 = vector.load %arg8[%c24, %c0_72] : memref<32x256xf32, #tpu.memory_space<vmem>>, vector<4x256xf32>
    %cst_73 = arith.constant dense<0.000000e+00> : vector<4x256xf32>
    %227 = tpu.matmul %217, %7, %cst_73 {dimension_numbers = #tpu.dot_dimension_numbers<[1], [0], [0], [1], [0, 0, 1, 1], [], []>} : vector<4x64xf32>, vector<64x256xf32>, vector<4x256xf32> -> vector<4x256xf32>
    %228 = arith.addf %226, %227 : vector<4x256xf32>
    %229 = vector.extract_strided_slice %228 {offsets = [0, 0], sizes = [4, 64], strides = [1, 1]} : vector<4x256xf32> to vector<4x64xf32>
    %230 = arith.negf %229 : vector<4x64xf32>
    %231 = math.exp %230 : vector<4x64xf32>
    %cst_74 = arith.constant 1.000000e+00 : f32
    %232 = vector.broadcast %cst_74 : f32 to vector<4x64xf32>
    %233 = arith.addf %232, %231 : vector<4x64xf32>
    %234 = arith.divf %232, %233 : vector<4x64xf32>
    %235 = vector.extract_strided_slice %228 {offsets = [0, 64], sizes = [4, 64], strides = [1, 1]} : vector<4x256xf32> to vector<4x64xf32>
    %236 = arith.negf %235 : vector<4x64xf32>
    %237 = math.exp %236 : vector<4x64xf32>
    %cst_75 = arith.constant 1.000000e+00 : f32
    %238 = vector.broadcast %cst_75 : f32 to vector<4x64xf32>
    %239 = arith.addf %238, %237 : vector<4x64xf32>
    %240 = arith.divf %238, %239 : vector<4x64xf32>
    %241 = vector.extract_strided_slice %228 {offsets = [0, 128], sizes = [4, 64], strides = [1, 1]} : vector<4x256xf32> to vector<4x64xf32>
    %242 = math.tanh %241 : vector<4x64xf32>
    %243 = vector.extract_strided_slice %228 {offsets = [0, 192], sizes = [4, 64], strides = [1, 1]} : vector<4x256xf32> to vector<4x64xf32>
    %244 = arith.negf %243 : vector<4x64xf32>
    %245 = math.exp %244 : vector<4x64xf32>
    %cst_76 = arith.constant 1.000000e+00 : f32
    %246 = vector.broadcast %cst_76 : f32 to vector<4x64xf32>
    %247 = arith.addf %246, %245 : vector<4x64xf32>
    %248 = arith.divf %246, %247 : vector<4x64xf32>
    %249 = arith.mulf %240, %215 : vector<4x64xf32>
    %250 = arith.mulf %234, %242 : vector<4x64xf32>
    %251 = arith.addf %249, %250 : vector<4x64xf32>
    %252 = math.tanh %251 : vector<4x64xf32>
    %253 = arith.mulf %248, %252 : vector<4x64xf32>
    %254 = vector.extract_strided_slice %253 {offsets = [0, 0], sizes = [4, 32], strides = [1, 1]} : vector<4x64xf32> to vector<4x32xf32>
    %c6_77 = arith.constant 6 : index
    %c0_78 = arith.constant 0 : index
    %c0_79 = arith.constant 0 : index
    %255 = vector.load %arg9[%c6_77, %c0_78, %c0_79] : memref<8x4x32xf32, #tpu.memory_space<vmem>>, vector<1x4x32xf32>
    %256 = vector.shape_cast %255 : vector<1x4x32xf32> to vector<4x32xf32>
    %257 = vector.shape_cast %254 : vector<4x32xf32> to vector<1x4x32xf32>
    tpu.vector_store %arg9[%c6_77, %c0_78, %c0_79], %257 {strides = array<i32>} : memref<8x4x32xf32, #tpu.memory_space<vmem>>, vector<1x4x32xf32>,
    %258 = vector.extract_strided_slice %253 {offsets = [0, 32], sizes = [4, 32], strides = [1, 1]} : vector<4x64xf32> to vector<4x32xf32>
    %c1_80 = arith.constant 1 : index
    %c0_81 = arith.constant 0 : index
    %c0_82 = arith.constant 0 : index
    %259 = vector.load %arg10[%c1_80, %c0_81, %c0_82] : memref<8x4x32xf32, #tpu.memory_space<vmem>>, vector<1x4x32xf32>
    %260 = vector.shape_cast %259 : vector<1x4x32xf32> to vector<4x32xf32>
    %261 = vector.shape_cast %258 : vector<4x32xf32> to vector<1x4x32xf32>
    tpu.vector_store %arg10[%c1_80, %c0_81, %c0_82], %261 {strides = array<i32>} : memref<8x4x32xf32, #tpu.memory_space<vmem>>, vector<1x4x32xf32>,
    %c28 = arith.constant 28 : index
    %c0_83 = arith.constant 0 : index
    %262 = vector.load %arg8[%c28, %c0_83] : memref<32x256xf32, #tpu.memory_space<vmem>>, vector<4x256xf32>
    %cst_84 = arith.constant dense<0.000000e+00> : vector<4x256xf32>
    %263 = tpu.matmul %253, %7, %cst_84 {dimension_numbers = #tpu.dot_dimension_numbers<[1], [0], [0], [1], [0, 0, 1, 1], [], []>} : vector<4x64xf32>, vector<64x256xf32>, vector<4x256xf32> -> vector<4x256xf32>
    %264 = arith.addf %262, %263 : vector<4x256xf32>
    %265 = vector.extract_strided_slice %264 {offsets = [0, 0], sizes = [4, 64], strides = [1, 1]} : vector<4x256xf32> to vector<4x64xf32>
    %266 = arith.negf %265 : vector<4x64xf32>
    %267 = math.exp %266 : vector<4x64xf32>
    %cst_85 = arith.constant 1.000000e+00 : f32
    %268 = vector.broadcast %cst_85 : f32 to vector<4x64xf32>
    %269 = arith.addf %268, %267 : vector<4x64xf32>
    %270 = arith.divf %268, %269 : vector<4x64xf32>
    %271 = vector.extract_strided_slice %264 {offsets = [0, 64], sizes = [4, 64], strides = [1, 1]} : vector<4x256xf32> to vector<4x64xf32>
    %272 = arith.negf %271 : vector<4x64xf32>
    %273 = math.exp %272 : vector<4x64xf32>
    %cst_86 = arith.constant 1.000000e+00 : f32
    %274 = vector.broadcast %cst_86 : f32 to vector<4x64xf32>
    %275 = arith.addf %274, %273 : vector<4x64xf32>
    %276 = arith.divf %274, %275 : vector<4x64xf32>
    %277 = vector.extract_strided_slice %264 {offsets = [0, 128], sizes = [4, 64], strides = [1, 1]} : vector<4x256xf32> to vector<4x64xf32>
    %278 = math.tanh %277 : vector<4x64xf32>
    %279 = vector.extract_strided_slice %264 {offsets = [0, 192], sizes = [4, 64], strides = [1, 1]} : vector<4x256xf32> to vector<4x64xf32>
    %280 = arith.negf %279 : vector<4x64xf32>
    %281 = math.exp %280 : vector<4x64xf32>
    %cst_87 = arith.constant 1.000000e+00 : f32
    %282 = vector.broadcast %cst_87 : f32 to vector<4x64xf32>
    %283 = arith.addf %282, %281 : vector<4x64xf32>
    %284 = arith.divf %282, %283 : vector<4x64xf32>
    %285 = arith.mulf %276, %251 : vector<4x64xf32>
    %286 = arith.mulf %270, %278 : vector<4x64xf32>
    %287 = arith.addf %285, %286 : vector<4x64xf32>
    %288 = math.tanh %287 : vector<4x64xf32>
    %289 = arith.mulf %284, %288 : vector<4x64xf32>
    %290 = vector.extract_strided_slice %289 {offsets = [0, 0], sizes = [4, 32], strides = [1, 1]} : vector<4x64xf32> to vector<4x32xf32>
    %c7_88 = arith.constant 7 : index
    %c0_89 = arith.constant 0 : index
    %c0_90 = arith.constant 0 : index
    %291 = vector.load %arg9[%c7_88, %c0_89, %c0_90] : memref<8x4x32xf32, #tpu.memory_space<vmem>>, vector<1x4x32xf32>
    %292 = vector.shape_cast %291 : vector<1x4x32xf32> to vector<4x32xf32>
    %293 = vector.shape_cast %290 : vector<4x32xf32> to vector<1x4x32xf32>
    tpu.vector_store %arg9[%c7_88, %c0_89, %c0_90], %293 {strides = array<i32>} : memref<8x4x32xf32, #tpu.memory_space<vmem>>, vector<1x4x32xf32>,
    %294 = vector.extract_strided_slice %289 {offsets = [0, 32], sizes = [4, 32], strides = [1, 1]} : vector<4x64xf32> to vector<4x32xf32>
    %c0_91 = arith.constant 0 : index
    %c0_92 = arith.constant 0 : index
    %c0_93 = arith.constant 0 : index
    %295 = vector.load %arg10[%c0_91, %c0_92, %c0_93] : memref<8x4x32xf32, #tpu.memory_space<vmem>>, vector<1x4x32xf32>
    %296 = vector.shape_cast %295 : vector<1x4x32xf32> to vector<4x32xf32>
    %297 = vector.shape_cast %294 : vector<4x32xf32> to vector<1x4x32xf32>
    tpu.vector_store %arg10[%c0_91, %c0_92, %c0_93], %297 {strides = array<i32>} : memref<8x4x32xf32, #tpu.memory_space<vmem>>, vector<1x4x32xf32>,
    %c0_94 = arith.constant 0 : index
    %c0_95 = arith.constant 0 : index
    %c0_96 = arith.constant 0 : index
    %298 = vector.load %arg9[%c0_94, %c0_95, %c0_96] : memref<8x4x32xf32, #tpu.memory_space<vmem>>, vector<8x4x32xf32>
    %c0_97 = arith.constant 0 : index
    %c0_98 = arith.constant 0 : index
    %c0_99 = arith.constant 0 : index
    %299 = vector.load %arg5[%c0_97, %c0_98, %c0_99] : memref<8x4x64xf32, #tpu.memory_space<vmem>>, vector<8x4x32xf32>
    tpu.vector_store %arg5[%c0_97, %c0_98, %c0_99], %298 {strides = array<i32>} : memref<8x4x64xf32, #tpu.memory_space<vmem>>, vector<8x4x32xf32>,
    %c0_100 = arith.constant 0 : index
    %c0_101 = arith.constant 0 : index
    %c0_102 = arith.constant 0 : index
    %300 = vector.load %arg10[%c0_100, %c0_101, %c0_102] : memref<8x4x32xf32, #tpu.memory_space<vmem>>, vector<8x4x32xf32>
    %c0_103 = arith.constant 0 : index
    %c0_104 = arith.constant 0 : index
    %c32 = arith.constant 32 : index
    %301 = vector.load %arg5[%c0_103, %c0_104, %c32] : memref<8x4x64xf32, #tpu.memory_space<vmem>>, vector<8x4x32xf32>
    tpu.vector_store %arg5[%c0_103, %c0_104, %c32], %300 {strides = array<i32>} : memref<8x4x64xf32, #tpu.memory_space<vmem>>, vector<8x4x32xf32>,
    %302 = vector.extract_strided_slice %289 {offsets = [0, 0], sizes = [4, 32], strides = [1, 1]} : vector<4x64xf32> to vector<4x32xf32>
    %c0_105 = arith.constant 0 : index
    %c0_106 = arith.constant 0 : index
    %c0_107 = arith.constant 0 : index
    %303 = vector.load %arg6[%c0_105, %c0_106, %c0_107] : memref<2x4x32xf32, #tpu.memory_space<vmem>>, vector<1x4x32xf32>
    %304 = vector.shape_cast %303 : vector<1x4x32xf32> to vector<4x32xf32>
    %305 = vector.shape_cast %302 : vector<4x32xf32> to vector<1x4x32xf32>
    tpu.vector_store %arg6[%c0_105, %c0_106, %c0_107], %305 {strides = array<i32>} : memref<2x4x32xf32, #tpu.memory_space<vmem>>, vector<1x4x32xf32>,
    %306 = vector.extract_strided_slice %289 {offsets = [0, 32], sizes = [4, 32], strides = [1, 1]} : vector<4x64xf32> to vector<4x32xf32>
    %c1_108 = arith.constant 1 : index
    %c0_109 = arith.constant 0 : index
    %c0_110 = arith.constant 0 : index
    %307 = vector.load %arg6[%c1_108, %c0_109, %c0_110] : memref<2x4x32xf32, #tpu.memory_space<vmem>>, vector<1x4x32xf32>
    %308 = vector.shape_cast %307 : vector<1x4x32xf32> to vector<4x32xf32>
    %309 = vector.shape_cast %306 : vector<4x32xf32> to vector<1x4x32xf32>
    tpu.vector_store %arg6[%c1_108, %c0_109, %c0_110], %309 {strides = array<i32>} : memref<2x4x32xf32, #tpu.memory_space<vmem>>, vector<1x4x32xf32>,
    %310 = vector.extract_strided_slice %287 {offsets = [0, 0], sizes = [4, 32], strides = [1, 1]} : vector<4x64xf32> to vector<4x32xf32>
    %c0_111 = arith.constant 0 : index
    %c0_112 = arith.constant 0 : index
    %c0_113 = arith.constant 0 : index
    %311 = vector.load %arg7[%c0_111, %c0_112, %c0_113] : memref<2x4x32xf32, #tpu.memory_space<vmem>>, vector<1x4x32xf32>
    %312 = vector.shape_cast %311 : vector<1x4x32xf32> to vector<4x32xf32>
    %313 = vector.shape_cast %310 : vector<4x32xf32> to vector<1x4x32xf32>
    tpu.vector_store %arg7[%c0_111, %c0_112, %c0_113], %313 {strides = array<i32>} : memref<2x4x32xf32, #tpu.memory_space<vmem>>, vector<1x4x32xf32>,
    %314 = vector.extract_strided_slice %287 {offsets = [0, 32], sizes = [4, 32], strides = [1, 1]} : vector<4x64xf32> to vector<4x32xf32>
    %c1_114 = arith.constant 1 : index
    %c0_115 = arith.constant 0 : index
    %c0_116 = arith.constant 0 : index
    %315 = vector.load %arg7[%c1_114, %c0_115, %c0_116] : memref<2x4x32xf32, #tpu.memory_space<vmem>>, vector<1x4x32xf32>
    %316 = vector.shape_cast %315 : vector<1x4x32xf32> to vector<4x32xf32>
    %317 = vector.shape_cast %314 : vector<4x32xf32> to vector<1x4x32xf32>
    tpu.vector_store %arg7[%c1_114, %c0_115, %c0_116], %317 {strides = array<i32>} : memref<2x4x32xf32, #tpu.memory_space<vmem>>, vector<1x4x32xf32>,
    return
  }
  func.func @transform_0(%arg0: i32) -> (i32, i32) {
    %c0_i32 = arith.constant 0 : i32
    %c0_i32_0 = arith.constant 0 : i32
    %c0_i32_1 = arith.constant 0 : i32
    return %c0_i32, %c0_i32_0 : i32, i32
  }
  func.func @transform_1(%arg0: i32) -> (i32, i32) {
    %c0_i32 = arith.constant 0 : i32
    %c0_i32_0 = arith.constant 0 : i32
    %c0_i32_1 = arith.constant 0 : i32
    return %c0_i32, %c0_i32_0 : i32, i32
  }
  func.func @transform_2(%arg0: i32) -> (i32, i32) {
    %c0_i32 = arith.constant 0 : i32
    %c0_i32_0 = arith.constant 0 : i32
    %c0_i32_1 = arith.constant 0 : i32
    return %c0_i32, %c0_i32_0 : i32, i32
  }
  func.func @transform_3(%arg0: i32) -> (i32, i32) {
    %c0_i32 = arith.constant 0 : i32
    %c0_i32_0 = arith.constant 0 : i32
    %c0_i32_1 = arith.constant 0 : i32
    return %c0_i32, %c0_i32_0 : i32, i32
  }
  func.func @transform_4(%arg0: i32) -> (i32, i32, i32) {
    %c0_i32 = arith.constant 0 : i32
    %c0_i32_0 = arith.constant 0 : i32
    %c0_i32_1 = arith.constant 0 : i32
    %c0_i32_2 = arith.constant 0 : i32
    return %c0_i32, %c0_i32_0, %c0_i32_1 : i32, i32, i32
  }
  func.func @transform_5(%arg0: i32) -> (i32, i32, i32) {
    %c0_i32 = arith.constant 0 : i32
    %c0_i32_0 = arith.constant 0 : i32
    %c0_i32_1 = arith.constant 0 : i32
    %c0_i32_2 = arith.constant 0 : i32
    return %c0_i32, %c0_i32_0, %c0_i32_1 : i32, i32, i32
  }
  func.func @transform_6(%arg0: i32) -> (i32, i32, i32) {
    %c0_i32 = arith.constant 0 : i32
    %c0_i32_0 = arith.constant 0 : i32
    %c0_i32_1 = arith.constant 0 : i32
    %c0_i32_2 = arith.constant 0 : i32
    return %c0_i32, %c0_i32_0, %c0_i32_1 : i32, i32, i32
  }
}

</mosaic_0001>

<bundles_post_ra>
// kernel: encoder_rnn_forward.1
= control target key start
LH: loop header
LB: loop body
LE: loop exit
PB: predicated region body
PF: predicated region fallthrough
CT: control target
= control target key end

     0   :  { %12 = vsyncpa [#allocation6], 0  ;;  %v1434_v4 = vmov 0.0   ;;  %s1893_s0 = inlined_call_operand.vmem [shape: f32[32,64], index: 0, kind: input, shape index: {}]   ;;  %s1894_s1 = inlined_call_operand.vmem [shape: f32[64,256], index: 1, kind: input, shape index: {}]   ;;  %s1895_s2 = inlined_call_operand.vmem [shape: f32[64,256], index: 2, kind: input, shape index: {}]   ;;  %s1896_s3 = inlined_call_operand.vmem [shape: f32[1,256], index: 3, kind: input, shape index: {}]   ;;  %s1897_s4 = inlined_call_operand.hbm [shape: f32[8,4,64], index: 4, kind: output, shape index: {0}]   ;;  %s1898_s5 = inlined_call_operand.hbm [shape: f32[2,4,32], index: 5, kind: output, shape index: {1}]   ;;  %s1899_s6 = inlined_call_operand.hbm [shape: f32[2,4,32], index: 6, kind: output, shape index: {2}]  }
   0x1   :  { %v41_v0 = vld [vmem:[%s1894_s1 + $0x78] sm:$0xff]  ;;  %v40_v1 = vld [vmem:[%s1894_s1 + $0x70] sm:$0xff]  ;;  %v39_v2 = vld [vmem:[%s1894_s1 + $0x68] sm:$0xff]  ;;  %131 = vmatprep.mubr.f32.mxu0 %v1434_v4  ;;  %249 = vmatprep.mubr.f32.mxu1 %v1434_v4 }
   0x2   :  { %83 = vmatprep.subr.mxu0 %v41_v0  ;;  %v38_v3 = vld [vmem:[%s1894_s1 + $0x60] sm:$0xff]  ;;  %v37_v5 = vld [vmem:[%s1894_s1 + $0x58] sm:$0xff]  ;;  %v36_v6 = vld [vmem:[%s1894_s1 + $0x50] sm:$0xff] }
   0x3   :  { %84 = vmatpush1.msra.mxu0 %v40_v1  ;;  %v1499_v7 = vld [vmem:[%s1895_s2 + $0x78] sm:$0xff]  ;;  %v1504_v8 = vld [vmem:[%s1895_s2 + $0x70] sm:$0xff]  ;;  %v35_v9 = vld [vmem:[%s1894_s1 + $0x48] sm:$0xff] }
   0x4   :  { %85 = vmatprep.subr.mxu0 %v39_v2  ;;  %201 = vmatprep.subr.mxu1 %v1499_v7  ;;  %v1513_v10 = vld [vmem:[%s1895_s2 + $0x68] sm:$0xff]  ;;  %v34_v11 = vld [vmem:[%s1894_s1 + $0x40] sm:$0xff]  ;;  %v1527_v13 = vld [vmem:[%s1895_s2 + $0x58] sm:$0xff] }
   0x5   :  { %86 = vmatpush1.msra.mxu0 %v38_v3  ;;  %202 = vmatpush1.msra.mxu1 %v1504_v8  ;;  %v1522_v12 = vld [vmem:[%s1895_s2 + $0x60] sm:$0xff]  ;;  %v33_v14 = vld [vmem:[%s1894_s1 + $0x38] sm:$0xff]  ;;  %v1536_v15 = vld [vmem:[%s1895_s2 + $0x50] sm:$0xff] }
   0x6   :  { %87 = vmatprep.subr.mxu0 %v37_v5  ;;  %203 = vmatprep.subr.mxu1 %v1513_v10  ;;  %v32_v16 = vld [vmem:[%s1894_s1 + $0x30] sm:$0xff]  ;;  %v1545_v17 = vld [vmem:[%s1895_s2 + $0x48] sm:$0xff]  ;;  %v1554_v19 = vld [vmem:[%s1895_s2 + $0x40] sm:$0xff] }
   0x7   :  { %88 = vmatpush1.msra.mxu0 %v36_v6  ;;  %204 = vmatpush1.msra.mxu1 %v1522_v12  ;;  %v31_v18 = vld [vmem:[%s1894_s1 + $0x28] sm:$0xff]  ;;  %v30_v20 = vld [vmem:[%s1894_s1 + $0x20] sm:$0xff]  ;;  %v1563_v21 = vld [vmem:[%s1895_s2 + $0x38] sm:$0xff] }
   0x8   :  { %89 = vmatprep.subr.mxu0 %v35_v9  ;;  %205 = vmatprep.subr.mxu1 %v1527_v13  ;;  %v29_v22 = vld [vmem:[%s1894_s1 + $0x18] sm:$0xff]  ;;  %v1572_v23 = vld [vmem:[%s1895_s2 + $0x30] sm:$0xff]  ;;  %v1581_v25 = vld [vmem:[%s1895_s2 + $0x28] sm:$0xff] }
   0x9   :  { %90 = vmatpush1.msra.mxu0 %v34_v11  ;;  %206 = vmatpush1.msra.mxu1 %v1536_v15  ;;  %v28_v24 = vld [vmem:[%s1894_s1 + $0x10] sm:$0xff] }
   0xa   :  { %91 = vmatprep.subr.mxu0 %v33_v14  ;;  %207 = vmatprep.subr.mxu1 %v1545_v17 }
   0xb   :  { %92 = vmatpush1.msra.mxu0 %v32_v16  ;;  %208 = vmatpush1.msra.mxu1 %v1554_v19 }
   0xc   :  { %93 = vmatprep.subr.mxu0 %v31_v18 }
   0xd   :  { %13 = vsyncpa [#allocation8], 0  ;;  %94 = vmatpush1.msra.mxu0 %v30_v20  ;;  %v27_v26 = vld [vmem:[%s1894_s1 + $0x8] sm:$0xff]  ;;  %209 = vmatprep.subr.mxu1 %v1563_v21  ;;  %v1590_v27 = vld [vmem:[%s1895_s2 + $0x20] sm:$0xff]  ;;  %vm54_vm0 = vcmask 523264   ;;  %v44_v34 = vlaneseq  ;;  %vm284_vm1 = vcmask 257024  }
   0xe   :  { %95 = vmatprep.subr.mxu0 %v29_v22  ;;  %v26_v28 = vld [vmem:[%s1894_s1] sm:$0xff]  ;;  %210 = vmatpush1.msra.mxu1 %v1572_v23  ;;  %v1599_v29 = vld [vmem:[%s1895_s2 + $0x18] sm:$0xff]  ;;  %v1608_v31 = vld [vmem:[%s1895_s2 + $0x10] sm:$0xff]  ;;  %vm404_vm2 = vcmask 261124   ;;  %vm1171_vm3 = vcmask 519424   ;;  %s1437_s21 = smov [#allocation7]  }
   0xf   :  { %96 = vmatpush1.msra.mxu0 %v28_v24  ;;  %v22_v30 = vld [vmem:[%s1893_s0] sm:$0xff]  ;;  %211 = vmatprep.subr.mxu1 %v1581_v25  ;;  %v1614_v32 = vld [vmem:[%s1895_s2 + $0x8] sm:$0xff]  ;;  %v45_v35 = vshrl.u32 %v44_v34, 7  ;;  %v24_v58 = vld [vmem:[%s1893_s0 + $0x10] sm:$0xff]  ;;  %s1210_s22 = sshll.u32 %s1437_s21, 4  ;;  %s1211_s22 = int_to_ptr.vmem [resolvable:$true] %s1210_s22 }
  0x10   :  { %97 = vmatprep.subr.mxu0 %v27_v26  ;;  %212 = vmatpush1.msra.mxu1 %v1590_v27  ;;  %v1620_v33 = vld [vmem:[%s1895_s2] sm:$0xff]  ;;  %v23_v57 = vld [vmem:[%s1893_s0 + $0x8] sm:$0xff]  ;;  %v25_v59 = vld [vmem:[%s1893_s0 + $0x18] sm:$0xff]  ;;  %s1436_s0 = smov 32   ;;  %s1370_s23 = scalar_lea.vmem %s1211_s22, 128 }
  0x11   :  { %98 = vmatpush1.msra.mxu0 %v26_v28  ;;  %213 = vmatprep.subr.mxu1 %v1599_v29  ;;  %v46_v36 = vsub.s32 0, %v45_v35  ;;  %v42_v37 = vld [vmem:[%s1896_s3] sm:$0x3]  ;;  %v50_v38 = vsub.s32 1, %v45_v35  ;;  %s1435_s3 = smov 64   ;;  %p1371_p0 = scmp.ne.s32.totalorder %s1211_s22, %s1370_s23 }
  0x12   :  { %1240 = vmatmul.mubr.msk.f32.vlgmr.msra.gmra.mxu0 %vm54_vm0, %v22_v30  ;;  %214 = vmatpush1.msra.mxu1 %v1608_v31  ;;  %p1375_p1 = scmp.lt.s32.totalorder %s1211_s22, %s1211_s22  ;;  %p1376_p2 = scmp.lt.s32.totalorder %s1370_s23, %s1370_s23 }
  0x13   :  { %215 = vmatprep.subr.mxu1 %v1614_v32  ;;  %311 = vmatprep.subr.mxu0 %v1499_v7  ;;  %v47_v39 = vrot.slane %v42_v37, %v46_v36  ;;  %v51_v40 = vrot.slane %v42_v37, %v50_v38 }
  0x14   :  { %216 = vmatpush1.msra.mxu1 %v1620_v33  ;;  %312 = vmatpush1.msra.mxu0 %v1504_v8  ;;  %p1377_p3 = por %p1376_p2, %p1375_p1 }
  0x15   :  { %250 = vmatmul.mubr.f32.vlgmr.msra.gmra.mxu1 %v1434_v4  ;;  %137 = vmatprep.mubr.f32.mxu0 %v1434_v4 }
  0x16   :  { %313 = vmatprep.subr.mxu0 %v1513_v10  ;;  %434 = vmatprep.subr.mxu1 %v1499_v7  ;;  %p1378_p4 = pnand %p1377_p3, %p1371_p0 }
  0x17   :  { %314 = vmatpush1.msra.mxu0 %v1522_v12  ;;  %435 = vmatpush1.msra.mxu1 %v1504_v8 }
  0x18   :  { %315 = vmatprep.subr.mxu0 %v1527_v13  ;;  %436 = vmatprep.subr.mxu1 %v1513_v10 }
  0x19   :  { %316 = vmatpush1.msra.mxu0 %v1536_v15  ;;  %437 = vmatpush1.msra.mxu1 %v1522_v12 }
  0x1a   :  { %317 = vmatprep.subr.mxu0 %v1545_v17  ;;  %438 = vmatprep.subr.mxu1 %v1527_v13 }
  0x1b   :  { %318 = vmatpush1.msra.mxu0 %v1554_v19  ;;  %439 = vmatpush1.msra.mxu1 %v1536_v15 }
  0x1c   :  { %319 = vmatprep.subr.mxu0 %v1563_v21  ;;  %440 = vmatprep.subr.mxu1 %v1545_v17 }
  0x1d   :  { %320 = vmatpush1.msra.mxu0 %v1572_v23  ;;  %441 = vmatpush1.msra.mxu1 %v1554_v19 }
  0x1e   :  { %321 = vmatprep.subr.mxu0 %v1581_v25  ;;  %442 = vmatprep.subr.mxu1 %v1563_v21 }
  0x1f   :  { %322 = vmatpush1.msra.mxu0 %v1590_v27  ;;  %443 = vmatpush1.msra.mxu1 %v1572_v23 }
  0x20   :  { %323 = vmatprep.subr.mxu0 %v1599_v29  ;;  %444 = vmatprep.subr.mxu1 %v1581_v25 }
  0x21   :  { %324 = vmatpush1.msra.mxu0 %v1608_v31  ;;  %445 = vmatpush1.msra.mxu1 %v1590_v27 }
  0x22   :  { %325 = vmatprep.subr.mxu0 %v1614_v32  ;;  %446 = vmatprep.subr.mxu1 %v1599_v29 }
  0x23   :  { %326 = vmatpush1.msra.mxu0 %v1620_v33  ;;  %447 = vmatpush1.msra.mxu1 %v1608_v31 }
  0x24   :  { %448 = vmatprep.subr.mxu1 %v1614_v32  ;;  %482 = vmatprep.mubr.f32.mxu1 %v1434_v4 }
  0x25   :  { %449 = vmatpush1.msra.mxu1 %v1620_v33  ;;  %547 = vmatprep.subr.mxu0 %v1499_v7 }
  0x26   :  { %669 = vmatprep.subr.mxu1 %v1499_v7  ;;  %1241 = vmatmul.mubr.msk.f32.gmra.mxu0 %vm54_vm0, %v23_v57 }
  0x27   :  { %143 = vmatprep.mubr.f32.mxu0 %v1434_v4 }
  0x2a   :  { %1242 = vmatmul.mubr.msk.f32.gmra.mxu0 %vm54_vm0, %v24_v58 }
  0x2b   :  { %149 = vmatprep.mubr.f32.mxu0 %v1434_v4 }
  0x2e   :  { %1243 = vmatmul.mubr.msk.f32.gmra.mxu0 %vm54_vm0, %v25_v59 }
  0x2f   :  { %359 = vmatprep.mubr.f32.mxu0 %v1434_v4 }
  0xd2   :  { %v133_v41 = vpop.f32.mrf.mxu0 }
  0xd3   :  { %v134_v42 = vadd.f32 %v133_v41, %v47_v39 }
  0xd4   :  { %v135_v43 = vpop.f32.mrf.mxu0 }
  0xd5   :  { %156 = vst [vmem:[#allocation2 + $0x30] sm:$0xff] %v134_v42  ;;  %v136_v44 = vadd.f32 %v135_v43, %v51_v40  ;;  %v251_v46 = vpop.f32.mrf.mxu1 }
  0xd7   :  { %157 = vst [vmem:[#allocation2] sm:$0xff] %v136_v44  ;;  %v253_v50 = vpop.f32.mrf.mxu1 }
  0xdc   :  { %v180_v45 = vld [vmem:[#allocation2 + $0x30] sm:$0xf]  ;;  %v291_v38 = vld [vmem:[#allocation2 + $0x30] sm:$0xf0] }
  0xdd   :  { %v256_v47 = vadd.f32 %v251_v46, %v180_v45 }
  0xde   :  { %v181_v49 = vld [vmem:[#allocation2] sm:$0xf]  ;;  %v292_v43 = vld [vmem:[#allocation2] sm:$0xf0] }
  0xdf   :  { %v1244_v48 = vmul.f32 -1.442695, %v256_v47  ;;  %v257_v51 = vadd.f32 %v253_v50, %v181_v49 }
  0xe1   :  { %1274 = vpow2.f32 %v1244_v48  ;;  %v1245_v60 = vmul.f32 -1.442695, %v257_v51 }
  0xe2   :  { %1276 = vtanh.f32 %v257_v51 }
  0xe6   :  { %v139_v6 = vpop.f32.mrf.mxu0 }
  0xe7   :  { %v140_v9 = vadd.f32 %v139_v6, %v47_v39 }
  0xe8   :  { %v141_v11 = vpop.f32.mrf.mxu0 }
  0xe9   :  { %158 = vst [vmem:[#allocation2 + $0x18] sm:$0xff] %v140_v9  ;;  %v142_v14 = vadd.f32 %v141_v11, %v51_v40 }
  0xea   :  { %v145_v16 = vpop.f32.mrf.mxu0 }
  0xeb   :  { %159 = vst [vmem:[#allocation2 + $0x10] sm:$0xff] %v142_v14  ;;  %v146_v18 = vadd.f32 %v145_v16, %v47_v39 }
  0xec   :  { %v147_v20 = vpop.f32.mrf.mxu0 }
  0xed   :  { %160 = vst [vmem:[#allocation2 + $0x8] sm:$0xff] %v146_v18  ;;  %v148_v22 = vadd.f32 %v147_v20, %v51_v40 }
  0xee   :  { %v1275_v52 = vpop.eup %1274  ;;  %v151_v24 = vpop.f32.mrf.mxu0 }
  0xef   :  { %v261_v53 = vadd.f32 1.0, %v1275_v52  ;;  %v1277_v54 = vpop.eup %1276  ;;  %161 = vst [vmem:[#allocation2 + $0x20] sm:$0xff] %v148_v22  ;;  %v152_v26 = vadd.f32 %v151_v24, %v47_v39 }
  0xf0   :  { %v153_v28 = vpop.f32.mrf.mxu0 }
  0xf1   :  { %1278 = vrcp.f32 %v261_v53  ;;  %162 = vst [vmem:[#allocation2 + $0x28] sm:$0xff] %v152_v26  ;;  %v154_v30 = vadd.f32 %v153_v28, %v51_v40 }
  0xf2   :  { %1280 = vpow2.f32 %v1245_v60 }
  0xf3   :  { %163 = vst [vmem:[#allocation2 + $0x38] sm:$0xff] %v154_v30 }
  0xfe   :  { %v1279_v55 = vpop.eup %1278 }
  0xff   :  { %v272_v56 = vmul.f32 %v1279_v55, %v1277_v54  ;;  %v1281_v61 = vpop.eup %1280  ;;  %v271_v63 = vmul.f32 0.0, %v1279_v55 }
 0x100   :  { %v268_v62 = vadd.f32 1.0, %v1281_v61 }
 0x101   :  { %274 = vrot.lane.b32.xlu0 %v272_v56, %s1435_s3 }
 0x102   :  { %1282 = vrcp.f32 %v268_v62  ;;  %v411_v62 = vld [vmem:[#allocation2 + $0x18] sm:$0xf] }
 0x10f   :  { %v1283_v2 = vpop.eup %1282 }
 0x173   :  { %v275_v0 = vpop.permute.xlu0 %274 }
 0x174   :  { %v1682_v1 = vadd.f32 %v275_v0, %v271_v63 }
 0x176   :  { %1284 = vtanh.f32 %v1682_v1  ;;  %v388_v48 = vrot.slane %v1682_v1, 4 }
 0x183   :  { %v1285_v3 = vpop.eup %1284 }
 0x184   :  { %v1685_v5 = vmul.f32 %v1285_v3, %v1283_v2  ;;  %v412_v3 = vld [vmem:[#allocation2 + $0x10] sm:$0xf] }
 0x186   :  { %281 = vrot.lane.b32.xlu0 %v1685_v5, %s1435_s3 }
 0x1f8   :  { %v282_v34 = vpop.permute.xlu0 %281 }
 0x1f9   :  { %285 = vst.msk [vmem:[#allocation3] sm:$0xf] %vm284_vm1, %v282_v34  ;;  %1246 = vmatmul.mubr.msk.f32.vlgmr.msra.gmra.mxu0 %vm54_vm0, %v282_v34 }
 0x1fa   :  { %548 = vmatpush1.msra.mxu0 %v1504_v8  ;;  %595 = vmatprep.mubr.f32.mxu0 %v1434_v4 }
 0x1fb   :  { %549 = vmatprep.subr.mxu0 %v1513_v10 }
 0x1fc   :  { %550 = vmatpush1.msra.mxu0 %v1522_v12 }
 0x1fd   :  { %551 = vmatprep.subr.mxu0 %v1527_v13 }
 0x1fe   :  { %552 = vmatpush1.msra.mxu0 %v1536_v15 }
 0x1ff   :  { %553 = vmatprep.subr.mxu0 %v1545_v17 }
 0x200   :  { %554 = vmatpush1.msra.mxu0 %v1554_v19  ;;  %v1115_v35 = vld [vmem:[#allocation3] sm:$0xf] }
 0x201   :  { %555 = vmatprep.subr.mxu0 %v1563_v21  ;;  %1123 = vst.msk [vmem:[#allocation5] sm:$0xf] %vm284_vm1, %v1115_v35 }
 0x202   :  { %556 = vmatpush1.msra.mxu0 %v1572_v23 }
 0x203   :  { %557 = vmatprep.subr.mxu0 %v1581_v25 }
 0x204   :  { %558 = vmatpush1.msra.mxu0 %v1590_v27 }
 0x205   :  { %559 = vmatprep.subr.mxu0 %v1599_v29 }
 0x206   :  { %560 = vmatpush1.msra.mxu0 %v1608_v31 }
 0x207   :  { %561 = vmatprep.subr.mxu0 %v1614_v32 }
 0x208   :  { %562 = vmatpush1.msra.mxu0 %v1620_v33 }
 0x209   :  { %782 = vmatprep.subr.mxu0 %v1499_v7 }
 0x2b9   :  { %v361_v36 = vpop.f32.mrf.mxu0 }
 0x2ba   :  { %v368_v37 = vrot.slane %v361_v36, 4 }
 0x2bb   :  { %v363_v41 = vpop.f32.mrf.mxu0 }
 0x2bc   :  { %v372_v39 = vadd.f32 %v368_v37, %v291_v38  ;;  %v369_v42 = vrot.slane %v363_v41, 4 }
 0x2be   :  { %v1247_v40 = vmul.f32 -1.442695, %v372_v39  ;;  %v373_v44 = vadd.f32 %v369_v42, %v292_v43  ;;  %v527_v42 = vld [vmem:[#allocation2 + $0x18] sm:$0xf0] }
 0x2c0   :  { %1286 = vpow2.f32 %v1247_v40  ;;  %v1248_v52 = vmul.f32 -1.442695, %v373_v44 }
 0x2c1   :  { %1288 = vtanh.f32 %v373_v44 }
 0x2cd   :  { %v1287_v45 = vpop.eup %1286 }
 0x2ce   :  { %v377_v46 = vadd.f32 1.0, %v1287_v45  ;;  %v1289_v47 = vpop.eup %1288 }
 0x2d0   :  { %1290 = vrcp.f32 %v377_v46 }
 0x2d1   :  { %1292 = vpow2.f32 %v1248_v52 }
 0x2dd   :  { %v1291_v49 = vpop.eup %1290 }
 0x2de   :  { %v391_v50 = vmul.f32 %v1291_v49, %v1289_v47  ;;  %v390_v51 = vmul.f32 %v1291_v49, %v388_v48  ;;  %v1293_v53 = vpop.eup %1292  ;;  %v528_v47 = vld [vmem:[#allocation2 + $0x10] sm:$0xf0] }
 0x2df   :  { %v384_v54 = vadd.f32 1.0, %v1293_v53 }
 0x2e0   :  { %393 = vrot.lane.b32.xlu1 %v391_v50, %s1435_s3 }
 0x2e1   :  { %1294 = vrcp.f32 %v384_v54 }
 0x2ee   :  { %v1295_v57 = vpop.eup %1294 }
 0x352   :  { %v394_v55 = vpop.permute.xlu1 %393 }
 0x353   :  { %v396_v56 = vadd.f32 %v394_v55, %v390_v51 }
 0x355   :  { %1296 = vtanh.f32 %v396_v56  ;;  %v505_v16 = vrot.slane %v396_v56, 4 }
 0x362   :  { %v1297_v58 = vpop.eup %1296 }
 0x363   :  { %v1711_v59 = vmul.f32 %v1297_v58, %v1295_v57 }
 0x365   :  { %v413_v60 = vrot.slane %v1711_v59, 4 }
 0x367   :  { %414 = vrot.lane.b32.xlu1 %v413_v60, %s1435_s3 }
 0x3d9   :  { %v415_v61 = vpop.permute.xlu1 %414 }
 0x3da   :  { %1249 = vmatmul.mubr.msk.f32.vlgmr.msra.gmra.mxu1 %vm54_vm0, %v415_v61 }
 0x3db   :  { %670 = vmatpush1.msra.mxu1 %v1504_v8  ;;  %717 = vmatprep.mubr.f32.mxu1 %v1434_v4 }
 0x3dc   :  { %671 = vmatprep.subr.mxu1 %v1513_v10 }
 0x3dd   :  { %672 = vmatpush1.msra.mxu1 %v1522_v12 }
 0x3de   :  { %673 = vmatprep.subr.mxu1 %v1527_v13 }
 0x3df   :  { %674 = vmatpush1.msra.mxu1 %v1536_v15 }
 0x3e0   :  { %675 = vmatprep.subr.mxu1 %v1545_v17 }
 0x3e1   :  { %676 = vmatpush1.msra.mxu1 %v1554_v19 }
 0x3e2   :  { %677 = vmatprep.subr.mxu1 %v1563_v21 }
 0x3e3   :  { %678 = vmatpush1.msra.mxu1 %v1572_v23 }
 0x3e4   :  { %679 = vmatprep.subr.mxu1 %v1581_v25 }
 0x3e5   :  { %680 = vmatpush1.msra.mxu1 %v1590_v27 }
 0x3e6   :  { %681 = vmatprep.subr.mxu1 %v1599_v29 }
 0x3e7   :  { %682 = vmatpush1.msra.mxu1 %v1608_v31 }
 0x3e8   :  { %683 = vmatprep.subr.mxu1 %v1614_v32 }
 0x3e9   :  { %684 = vmatpush1.msra.mxu1 %v1620_v33 }
 0x3ea   :  { %904 = vmatprep.subr.mxu1 %v1499_v7 }
 0x49a   :  { %v484_v63 = vpop.f32.mrf.mxu1 }
 0x49b   :  { %v489_v0 = vadd.f32 %v484_v63, %v411_v62 }
 0x49c   :  { %v486_v2 = vpop.f32.mrf.mxu1 }
 0x49d   :  { %v1250_v1 = vmul.f32 -1.442695, %v489_v0  ;;  %v490_v6 = vadd.f32 %v486_v2, %v412_v3  ;;  %v646_v2 = vld [vmem:[#allocation2 + $0x8] sm:$0xf] }
 0x49f   :  { %1298 = vpow2.f32 %v1250_v1  ;;  %v1251_v24 = vmul.f32 -1.442695, %v490_v6 }
 0x4a0   :  { %1300 = vtanh.f32 %v490_v6 }
 0x4ac   :  { %v1299_v9 = vpop.eup %1298 }
 0x4ad   :  { %v494_v11 = vadd.f32 1.0, %v1299_v9  ;;  %v1301_v14 = vpop.eup %1300 }
 0x4af   :  { %1302 = vrcp.f32 %v494_v11 }
 0x4b0   :  { %1304 = vpow2.f32 %v1251_v24 }
 0x4bc   :  { %v1303_v18 = vpop.eup %1302 }
 0x4bd   :  { %v508_v20 = vmul.f32 %v1303_v18, %v1301_v14  ;;  %v507_v22 = vmul.f32 %v1303_v18, %v505_v16  ;;  %v1305_v26 = vpop.eup %1304  ;;  %v647_v14 = vld [vmem:[#allocation2 + $0x20] sm:$0xf] }
 0x4be   :  { %v501_v28 = vadd.f32 1.0, %v1305_v26 }
 0x4bf   :  { %510 = vrot.lane.b32.xlu0 %v508_v20, %s1435_s3 }
 0x4c0   :  { %1306 = vrcp.f32 %v501_v28 }
 0x4cd   :  { %v1307_v35 = vpop.eup %1306 }
 0x531   :  { %v511_v30 = vpop.permute.xlu0 %510 }
 0x532   :  { %v513_v34 = vadd.f32 %v511_v30, %v507_v22 }
 0x534   :  { %1308 = vtanh.f32 %v513_v34  ;;  %v624_v52 = vrot.slane %v513_v34, 4 }
 0x541   :  { %v1309_v36 = vpop.eup %1308 }
 0x542   :  { %v1734_v37 = vmul.f32 %v1309_v36, %v1307_v35 }
 0x544   :  { %517 = vrot.lane.b32.xlu1 %v1734_v37, %s1435_s3 }
 0x5b6   :  { %v518_v38 = vpop.permute.xlu1 %517 }
 0x5b7   :  { %521 = vst.msk [vmem:[#allocation3 + $0x8] sm:$0xf] %vm284_vm1, %v518_v38  ;;  %1252 = vmatmul.mubr.msk.f32.vlgmr.msra.gmra.mxu0 %vm54_vm0, %v518_v38 }
 0x5b8   :  { %783 = vmatpush1.msra.mxu0 %v1504_v8  ;;  %830 = vmatprep.mubr.f32.mxu0 %v1434_v4 }
 0x5b9   :  { %784 = vmatprep.subr.mxu0 %v1513_v10 }
 0x5ba   :  { %785 = vmatpush1.msra.mxu0 %v1522_v12 }
 0x5bb   :  { %786 = vmatprep.subr.mxu0 %v1527_v13 }
 0x5bc   :  { %787 = vmatpush1.msra.mxu0 %v1536_v15 }
 0x5bd   :  { %788 = vmatprep.subr.mxu0 %v1545_v17 }
 0x5be   :  { %789 = vmatpush1.msra.mxu0 %v1554_v19  ;;  %v1117_v39 = vld [vmem:[#allocation3 + $0x8] sm:$0xf] }
 0x5bf   :  { %790 = vmatprep.subr.mxu0 %v1563_v21  ;;  %1125 = vst.msk [vmem:[#allocation5 + $0x8] sm:$0xf] %vm284_vm1, %v1117_v39 }
 0x5c0   :  { %791 = vmatpush1.msra.mxu0 %v1572_v23 }
 0x5c1   :  { %792 = vmatprep.subr.mxu0 %v1581_v25 }
 0x5c2   :  { %793 = vmatpush1.msra.mxu0 %v1590_v27 }
 0x5c3   :  { %794 = vmatprep.subr.mxu0 %v1599_v29 }
 0x5c4   :  { %795 = vmatpush1.msra.mxu0 %v1608_v31 }
 0x5c5   :  { %796 = vmatprep.subr.mxu0 %v1614_v32 }
 0x5c6   :  { %797 = vmatpush1.msra.mxu0 %v1620_v33 }
 0x5c7   :  { %1017 = vmatprep.subr.mxu0 %v1499_v7 }
 0x677   :  { %v597_v40 = vpop.f32.mrf.mxu0 }
 0x678   :  { %v604_v41 = vrot.slane %v597_v40, 4 }
 0x679   :  { %v599_v45 = vpop.f32.mrf.mxu0 }
 0x67a   :  { %v608_v43 = vadd.f32 %v604_v41, %v527_v42  ;;  %v605_v46 = vrot.slane %v599_v45, 4 }
 0x67c   :  { %v1253_v44 = vmul.f32 -1.442695, %v608_v43  ;;  %v609_v48 = vadd.f32 %v605_v46, %v528_v47 }
 0x67e   :  { %1310 = vpow2.f32 %v1253_v44  ;;  %v1254_v7 = vmul.f32 -1.442695, %v609_v48 }
 0x67f   :  { %1312 = vtanh.f32 %v609_v48 }
 0x68b   :  { %v1311_v49 = vpop.eup %1310 }
 0x68c   :  { %v613_v50 = vadd.f32 1.0, %v1311_v49  ;;  %v1313_v51 = vpop.eup %1312 }
 0x68e   :  { %1314 = vrcp.f32 %v613_v50 }
 0x68f   :  { %1316 = vpow2.f32 %v1254_v7 }
 0x69b   :  { %v1315_v53 = vpop.eup %1314 }
 0x69c   :  { %v627_v54 = vmul.f32 %v1315_v53, %v1313_v51  ;;  %v626_v55 = vmul.f32 %v1315_v53, %v624_v52  ;;  %v1317_v56 = vpop.eup %1316 }
 0x69d   :  { %v620_v57 = vadd.f32 1.0, %v1317_v56 }
 0x69e   :  { %629 = vrot.lane.b32.xlu0 %v627_v54, %s1435_s3 }
 0x69f   :  { %1318 = vrcp.f32 %v620_v57 }
 0x6ac   :  { %v1319_v61 = vpop.eup %1318 }
 0x710   :  { %v630_v58 = vpop.permute.xlu0 %629 }
 0x711   :  { %v632_v60 = vadd.f32 %v630_v58, %v626_v55  ;;  %v881_v55 = vld [vmem:[#allocation2 + $0x28] sm:$0xf] }
 0x713   :  { %1320 = vtanh.f32 %v632_v60  ;;  %v740_v24 = vrot.slane %v632_v60, 4  ;;  %v882_v60 = vld [vmem:[#allocation2 + $0x38] sm:$0xf] }
 0x720   :  { %v1321_v62 = vpop.eup %1320 }
 0x721   :  { %v1759_v63 = vmul.f32 %v1321_v62, %v1319_v61 }
 0x723   :  { %v648_v0 = vrot.slane %v1759_v63, 4 }
 0x725   :  { %649 = vrot.lane.b32.xlu1 %v648_v0, %s1435_s3 }
 0x797   :  { %v650_v1 = vpop.permute.xlu1 %649 }
 0x798   :  { %1255 = vmatmul.mubr.msk.f32.vlgmr.msra.gmra.mxu1 %vm54_vm0, %v650_v1 }
 0x799   :  { %905 = vmatpush1.msra.mxu1 %v1504_v8  ;;  %952 = vmatprep.mubr.f32.mxu1 %v1434_v4 }
 0x79a   :  { %906 = vmatprep.subr.mxu1 %v1513_v10 }
 0x79b   :  { %907 = vmatpush1.msra.mxu1 %v1522_v12 }
 0x79c   :  { %908 = vmatprep.subr.mxu1 %v1527_v13 }
 0x79d   :  { %909 = vmatpush1.msra.mxu1 %v1536_v15 }
 0x79e   :  { %910 = vmatprep.subr.mxu1 %v1545_v17 }
 0x79f   :  { %911 = vmatpush1.msra.mxu1 %v1554_v19 }
 0x7a0   :  { %912 = vmatprep.subr.mxu1 %v1563_v21 }
 0x7a1   :  { %913 = vmatpush1.msra.mxu1 %v1572_v23 }
 0x7a2   :  { %914 = vmatprep.subr.mxu1 %v1581_v25 }
 0x7a3   :  { %915 = vmatpush1.msra.mxu1 %v1590_v27 }
 0x7a4   :  { %916 = vmatprep.subr.mxu1 %v1599_v29 }
 0x7a5   :  { %917 = vmatpush1.msra.mxu1 %v1608_v31 }
 0x7a6   :  { %918 = vmatprep.subr.mxu1 %v1614_v32 }
 0x7a7   :  { %919 = vmatpush1.msra.mxu1 %v1620_v33 }
 0x858   :  { %v719_v3 = vpop.f32.mrf.mxu1 }
 0x859   :  { %v724_v6 = vadd.f32 %v719_v3, %v646_v2 }
 0x85a   :  { %v721_v11 = vpop.f32.mrf.mxu1 }
 0x85b   :  { %v1256_v9 = vmul.f32 -1.442695, %v724_v6  ;;  %v725_v16 = vadd.f32 %v721_v11, %v647_v14 }
 0x85d   :  { %1322 = vpow2.f32 %v1256_v9  ;;  %v1257_v34 = vmul.f32 -1.442695, %v725_v16 }
 0x85e   :  { %1324 = vtanh.f32 %v725_v16 }
 0x86a   :  { %v1323_v18 = vpop.eup %1322 }
 0x86b   :  { %v729_v20 = vadd.f32 1.0, %v1323_v18  ;;  %v1325_v22 = vpop.eup %1324 }
 0x86d   :  { %1326 = vrcp.f32 %v729_v20 }
 0x86e   :  { %1328 = vpow2.f32 %v1257_v34 }
 0x87a   :  { %v1327_v26 = vpop.eup %1326 }
 0x87b   :  { %v743_v28 = vmul.f32 %v1327_v26, %v1325_v22  ;;  %v742_v30 = vmul.f32 %v1327_v26, %v740_v24  ;;  %v1329_v35 = vpop.eup %1328 }
 0x87c   :  { %v736_v36 = vadd.f32 1.0, %v1329_v35 }
 0x87d   :  { %745 = vrot.lane.b32.xlu0 %v743_v28, %s1435_s3 }
 0x87e   :  { %1330 = vrcp.f32 %v736_v36 }
 0x88b   :  { %v1331_v40 = vpop.eup %1330 }
 0x8ef   :  { %v746_v38 = vpop.permute.xlu0 %745 }
 0x8f0   :  { %v748_v39 = vadd.f32 %v746_v38, %v742_v30 }
 0x8f2   :  { %1332 = vtanh.f32 %v748_v39 }
 0x8ff   :  { %v1333_v41 = vpop.eup %1332 }
 0x900   :  { %v1781_v42 = vmul.f32 %v1333_v41, %v1331_v40 }
 0x902   :  { %752 = vrot.lane.b32.xlu1 %v1781_v42, %s1435_s3 }
 0x974   :  { %v753_v43 = vpop.permute.xlu1 %752 }
 0x975   :  { %756 = vst.msk [vmem:[#allocation3 + $0x10] sm:$0xf] %vm284_vm1, %v753_v43  ;;  %1258 = vmatmul.mubr.msk.f32.vlgmr.msra.gmra.mxu0 %vm54_vm0, %v753_v43  ;;  %v997_v43 = vld [vmem:[#allocation2 + $0x28] sm:$0xf0] }
 0x976   :  { %1018 = vmatpush1.msra.mxu0 %v1504_v8  ;;  %1065 = vmatprep.mubr.f32.mxu0 %v1434_v4 }
 0x977   :  { %1019 = vmatprep.subr.mxu0 %v1513_v10  ;;  %v762_v10 = vld [vmem:[#allocation2 + $0x8] sm:$0xf0] }
 0x978   :  { %1020 = vmatpush1.msra.mxu0 %v1522_v12 }
 0x979   :  { %1021 = vmatprep.subr.mxu0 %v1527_v13 }
 0x97a   :  { %1022 = vmatpush1.msra.mxu0 %v1536_v15 }
 0x97b   :  { %1023 = vmatprep.subr.mxu0 %v1545_v17 }
 0x97c   :  { %1024 = vmatpush1.msra.mxu0 %v1554_v19  ;;  %v1119_v44 = vld [vmem:[#allocation3 + $0x10] sm:$0xf]  ;;  %v763_v19 = vld [vmem:[#allocation2 + $0x20] sm:$0xf0] }
 0x97d   :  { %1025 = vmatprep.subr.mxu0 %v1563_v21  ;;  %1127 = vst.msk [vmem:[#allocation5 + $0x10] sm:$0xf] %vm284_vm1, %v1119_v44 }
 0x97e   :  { %1026 = vmatpush1.msra.mxu0 %v1572_v23 }
 0x97f   :  { %1027 = vmatprep.subr.mxu0 %v1581_v25 }
 0x980   :  { %1028 = vmatpush1.msra.mxu0 %v1590_v27 }
 0x981   :  { %1029 = vmatprep.subr.mxu0 %v1599_v29  ;;  %v859_v29 = vrot.slane %v748_v39, 4 }
 0x982   :  { %1030 = vmatpush1.msra.mxu0 %v1608_v31 }
 0x983   :  { %1031 = vmatprep.subr.mxu0 %v1614_v32 }
 0x984   :  { %1032 = vmatpush1.msra.mxu0 %v1620_v33 }
 0xa35   :  { %v832_v4 = vpop.f32.mrf.mxu0 }
 0xa36   :  { %v839_v8 = vrot.slane %v832_v4, 4 }
 0xa37   :  { %v834_v15 = vpop.f32.mrf.mxu0 }
 0xa38   :  { %v843_v12 = vadd.f32 %v839_v8, %v762_v10  ;;  %v840_v17 = vrot.slane %v834_v15, 4 }
 0xa3a   :  { %v1259_v13 = vmul.f32 -1.442695, %v843_v12  ;;  %v844_v21 = vadd.f32 %v840_v17, %v763_v19  ;;  %v998_v12 = vld [vmem:[#allocation2 + $0x38] sm:$0xf0] }
 0xa3c   :  { %1334 = vpow2.f32 %v1259_v13  ;;  %v1260_v33 = vmul.f32 -1.442695, %v844_v21 }
 0xa3d   :  { %1336 = vtanh.f32 %v844_v21 }
 0xa49   :  { %v1335_v23 = vpop.eup %1334 }
 0xa4a   :  { %v848_v25 = vadd.f32 1.0, %v1335_v23  ;;  %v1337_v27 = vpop.eup %1336 }
 0xa4c   :  { %1338 = vrcp.f32 %v848_v25 }
 0xa4d   :  { %1340 = vpow2.f32 %v1260_v33 }
 0xa59   :  { %v1339_v31 = vpop.eup %1338 }
 0xa5a   :  { %v862_v32 = vmul.f32 %v1339_v31, %v1337_v27  ;;  %v861_v45 = vmul.f32 %v1339_v31, %v859_v29  ;;  %v1341_v46 = vpop.eup %1340 }
 0xa5b   :  { %v855_v47 = vadd.f32 1.0, %v1341_v46 }
 0xa5c   :  { %864 = vrot.lane.b32.xlu0 %v862_v32, %s1435_s3 }
 0xa5d   :  { %1342 = vrcp.f32 %v855_v47 }
 0xa6a   :  { %v1343_v50 = vpop.eup %1342 }
 0xace   :  { %v865_v48 = vpop.permute.xlu0 %864 }
 0xacf   :  { %v867_v49 = vadd.f32 %v865_v48, %v861_v45 }
 0xad1   :  { %1344 = vtanh.f32 %v867_v49  ;;  %v975_v2 = vrot.slane %v867_v49, 4 }
 0xade   :  { %v1345_v51 = vpop.eup %1344 }
 0xadf   :  { %v1805_v52 = vmul.f32 %v1345_v51, %v1343_v50 }
 0xae1   :  { %v883_v53 = vrot.slane %v1805_v52, 4 }
 0xae3   :  { %884 = vrot.lane.b32.xlu1 %v883_v53, %s1435_s3 }
 0xb55   :  { %v885_v54 = vpop.permute.xlu1 %884 }
 0xb56   :  { %1261 = vmatmul.mubr.msk.f32.vlgmr.msra.gmra.mxu1 %vm54_vm0, %v885_v54 }
 0xc16   :  { %v954_v7 = vpop.f32.mrf.mxu1 }
 0xc17   :  { %v959_v56 = vadd.f32 %v954_v7, %v881_v55 }
 0xc18   :  { %v956_v58 = vpop.f32.mrf.mxu1 }
 0xc19   :  { %v1262_v57 = vmul.f32 -1.442695, %v959_v56  ;;  %v960_v61 = vadd.f32 %v956_v58, %v882_v60 }
 0xc1b   :  { %1346 = vpow2.f32 %v1262_v57  ;;  %v1263_v11 = vmul.f32 -1.442695, %v960_v61 }
 0xc1c   :  { %1348 = vtanh.f32 %v960_v61 }
 0xc28   :  { %v1347_v62 = vpop.eup %1346 }
 0xc29   :  { %v964_v0 = vadd.f32 1.0, %v1347_v62  ;;  %v1349_v1 = vpop.eup %1348 }
 0xc2b   :  { %1350 = vrcp.f32 %v964_v0 }
 0xc2c   :  { %1352 = vpow2.f32 %v1263_v11 }
 0xc38   :  { %v1351_v3 = vpop.eup %1350 }
 0xc39   :  { %v978_v6 = vmul.f32 %v1351_v3, %v1349_v1  ;;  %v977_v9 = vmul.f32 %v1351_v3, %v975_v2  ;;  %v1353_v14 = vpop.eup %1352 }
 0xc3a   :  { %v971_v16 = vadd.f32 1.0, %v1353_v14 }
 0xc3b   :  { %980 = vrot.lane.b32.xlu0 %v978_v6, %s1435_s3 }
 0xc3c   :  { %1354 = vrcp.f32 %v971_v16 }
 0xc49   :  { %v1355_v22 = vpop.eup %1354 }
 0xcad   :  { %v981_v18 = vpop.permute.xlu0 %980 }
 0xcae   :  { %v983_v20 = vadd.f32 %v981_v18, %v977_v9 }
 0xcb0   :  { %1356 = vtanh.f32 %v983_v20  ;;  %v1094_v21 = vrot.slane %v983_v20, 4 }
 0xcbd   :  { %v1357_v24 = vpop.eup %1356 }
 0xcbe   :  { %v985_v26 = vmul.f32 %v1357_v24, %v1355_v22 }
 0xcc0   :  { %987 = vrot.lane.b32.xlu1 %v985_v26, %s1435_s3 }
 0xcc4   :  { %286 = vrot.lane.b32.xlu1 %v1685_v5, %s1436_s0 }
 0xcc8   :  { %522 = vrot.lane.b32.xlu1 %v1734_v37, %s1436_s0 }
 0xccc   :  { %757 = vrot.lane.b32.xlu1 %v1781_v42, %s1436_s0 }
 0xcd0   :  { %992 = vrot.lane.b32.xlu1 %v985_v26, %s1436_s0 }
 0xcd4   :  { %400 = vrot.lane.b32.xlu1 %v1711_v59, %s1435_s3 }
 0xcd8   :  { %871 = vrot.lane.b32.xlu1 %v1805_v52, %s1435_s3 }
 0xd32   :  { %v988_v28 = vpop.permute.xlu1 %987 }
 0xd33   :  { %991 = vst.msk [vmem:[#allocation3 + $0x18] sm:$0xf] %vm284_vm1, %v988_v28  ;;  %1264 = vmatmul.mubr.msk.f32.vlgmr.msra.gmra.mxu0 %vm54_vm0, %v988_v28 }
 0xd36   :  { %v287_v5 = vpop.permute.xlu1 %286 }
 0xd37   :  { %290 = vst.msk [vmem:[#allocation4 + $0x1c] sm:$0xf] %vm284_vm1, %v287_v5 }
 0xd3a   :  { %v523_v37 = vpop.permute.xlu1 %522  ;;  %v1121_v30 = vld [vmem:[#allocation3 + $0x18] sm:$0xf] }
 0xd3b   :  { %526 = vst.msk [vmem:[#allocation4 + $0x14] sm:$0xf] %vm284_vm1, %v523_v37  ;;  %1129 = vst.msk [vmem:[#allocation5 + $0x18] sm:$0xf] %vm284_vm1, %v1121_v30 }
 0xd3e   :  { %v758_v34 = vpop.permute.xlu1 %757  ;;  %v1138_v56 = vld [vmem:[#allocation4 + $0x1c] sm:$0xf] }
 0xd3f   :  { %761 = vst.msk [vmem:[#allocation4 + $0xc] sm:$0xf] %vm284_vm1, %v758_v34 }
 0xd42   :  { %v993_v35 = vpop.permute.xlu1 %992  ;;  %v1136_v7 = vld [vmem:[#allocation4 + $0x14] sm:$0xf] }
 0xd43   :  { %996 = vst.msk [vmem:[#allocation4 + $0x4] sm:$0xf] %vm284_vm1, %v993_v35 }
 0xd46   :  { %v401_v36 = vpop.permute.xlu1 %400  ;;  %v1134_v55 = vld [vmem:[#allocation4 + $0xc] sm:$0xf] }
 0xd47   :  { %405 = vst.msk [vmem:[#allocation3] sm:$0xf0] %vm404_vm2, %v401_v36 }
 0xd4a   :  { %v872_v38 = vpop.permute.xlu1 %871  ;;  %v1132_v53 = vld [vmem:[#allocation4 + $0x4] sm:$0xf] }
 0xd4b   :  { %875 = vst.msk [vmem:[#allocation3 + $0x10] sm:$0xf0] %vm404_vm2, %v872_v38 }
 0xd4e   :  { %v1116_v39 = vld [vmem:[#allocation3 + $0x4] sm:$0xf] }
 0xd4f   :  { %1124 = vst.msk [vmem:[#allocation5 + $0x4] sm:$0xf] %vm284_vm1, %v1116_v39 }
 0xd52   :  { %v1120_v40 = vld [vmem:[#allocation3 + $0x14] sm:$0xf] }
 0xd53   :  { %1128 = vst.msk [vmem:[#allocation5 + $0x14] sm:$0xf] %vm284_vm1, %v1120_v40 }
 0xdf3   :  { %v1067_v41 = vpop.f32.mrf.mxu0 }
 0xdf4   :  { %v1074_v42 = vrot.slane %v1067_v41, 4 }
 0xdf5   :  { %v1069_v8 = vpop.f32.mrf.mxu0 }
 0xdf6   :  { %v1078_v44 = vadd.f32 %v1074_v42, %v997_v43  ;;  %v1075_v10 = vrot.slane %v1069_v8, 4 }
 0xdf8   :  { %v1265_v4 = vmul.f32 -1.442695, %v1078_v44  ;;  %v1079_v13 = vadd.f32 %v1075_v10, %v998_v12 }
 0xdfa   :  { %1358 = vpow2.f32 %v1265_v4  ;;  %v1266_v29 = vmul.f32 -1.442695, %v1079_v13 }
 0xdfb   :  { %1360 = vtanh.f32 %v1079_v13 }
 0xe07   :  { %v1359_v15 = vpop.eup %1358 }
 0xe08   :  { %v1083_v17 = vadd.f32 1.0, %v1359_v15  ;;  %v1361_v19 = vpop.eup %1360 }
 0xe0a   :  { %1362 = vrcp.f32 %v1083_v17 }
 0xe0b   :  { %1364 = vpow2.f32 %v1266_v29 }
 0xe17   :  { %v1363_v23 = vpop.eup %1362 }
 0xe18   :  { %v1097_v25 = vmul.f32 %v1363_v23, %v1361_v19  ;;  %v1096_v27 = vmul.f32 %v1363_v23, %v1094_v21  ;;  %v1365_v31 = vpop.eup %1364 }
 0xe19   :  { %v1090_v32 = vadd.f32 1.0, %v1365_v31 }
 0xe1a   :  { %1099 = vrot.lane.b32.xlu0 %v1097_v25, %s1435_s3 }
 0xe1b   :  { %1366 = vrcp.f32 %v1090_v32 }
 0xe1e   :  { %406 = vrot.lane.b32.xlu0 %v1711_v59, %s1436_s0 }
 0xe22   :  { %641 = vrot.lane.b32.xlu0 %v1759_v63, %s1436_s0 }
 0xe26   :  { %876 = vrot.lane.b32.xlu0 %v1805_v52, %s1436_s0 }
 0xe28   :  { %v1367_v48 = vpop.eup %1366 }
 0xe8c   :  { %v1100_v45 = vpop.permute.xlu0 %1099 }
 0xe8d   :  { %v1102_v33 = vadd.f32 %v1100_v45, %v1096_v27 }
 0xe8f   :  { %1368 = vtanh.f32 %v1102_v33 }
 0xe90   :  { %v407_v46 = vpop.permute.xlu0 %406 }
 0xe91   :  { %410 = vst.msk [vmem:[#allocation4 + $0x14] sm:$0xf0] %vm404_vm2, %v407_v46 }
 0xe94   :  { %v642_v47 = vpop.permute.xlu0 %641 }
 0xe95   :  { %645 = vst.msk [vmem:[#allocation4 + $0xc] sm:$0xf0] %vm404_vm2, %v642_v47 }
 0xe98   :  { %v877_v59 = vpop.permute.xlu0 %876  ;;  %v1137_v54 = vld [vmem:[#allocation4 + $0x18] sm:$0xf] }
 0xe99   :  { %880 = vst.msk [vmem:[#allocation4 + $0x4] sm:$0xf0] %vm404_vm2, %v877_v59 }
 0xe9c   :  { %v1369_v49 = vpop.eup %1368  ;;  %v1135_v52 = vld [vmem:[#allocation4 + $0x10] sm:$0xf] }
 0xe9d   :  { %v1104_v50 = vmul.f32 %v1369_v49, %v1367_v48 }
 0xe9f   :  { %1111 = vrot.lane.b32.xlu0 %v1104_v50, %s1436_s0 }
 0xea0   :  { %v1133_v51 = vld [vmem:[#allocation4 + $0x8] sm:$0xf] }
 0xea1   :  { %1151 = vrot.lane.b32.xlu1 %v1133_v51, %s1436_s0 }
 0xea3   :  { %636 = vrot.lane.b32.xlu0 %v1759_v63, %s1435_s3 }
 0xea5   :  { %1155 = vrot.lane.b32.xlu1 %v1135_v52, %s1436_s0 }
 0xea7   :  { %1149 = vrot.lane.b32.xlu0 %v1132_v53, %s1436_s0 }
 0xea9   :  { %1159 = vrot.lane.b32.xlu1 %v1137_v54, %s1436_s0 }
 0xeab   :  { %1153 = vrot.lane.b32.xlu0 %v1134_v55, %s1436_s0 }
 0xeaf   :  { %1106 = vrot.lane.b32.xlu0 %v1104_v50, %s1435_s3 }
 0xeb3   :  { %1157 = vrot.lane.b32.xlu0 %v1136_v7, %s1436_s0 }
 0xeb7   :  { %1161 = vrot.lane.b32.xlu0 %v1138_v56, %s1436_s0 }
 0xebb   :  { %1188 = vrot.lane.b32.xlu0 %v1102_v33, %s1436_s0 }
 0xf11   :  { %v1112_v63 = vpop.permute.xlu0 %1111 }
 0xf12   :  { %1114 = vst.msk [vmem:[#allocation4 - $0x4] sm:$0xf0] %vm404_vm2, %v1112_v63  ;;  %1182 = vst.msk [vmem:[#allocation7] sm:$0xf0] %vm404_vm2, %v1112_v63 }
 0xf13   :  { %v1152_v57 = vpop.permute.xlu1 %1151 }
 0xf14   :  { %1174 = vst.msk [vmem:[#allocation5 + $0x8] sm:$0xf] %vm1171_vm3, %v1152_v57 }
 0xf15   :  { %v637_v58 = vpop.permute.xlu0 %636 }
 0xf16   :  { %640 = vst.msk [vmem:[#allocation3 + $0x8] sm:$0xf0] %vm404_vm2, %v637_v58 }
 0xf17   :  { %v1156_v60 = vpop.permute.xlu1 %1155 }
 0xf18   :  { %1176 = vst.msk [vmem:[#allocation5 + $0x10] sm:$0xf] %vm1171_vm3, %v1156_v60 }
 0xf19   :  { %v1150_v61 = vpop.permute.xlu0 %1149  ;;  %v1131_v62 = vld [vmem:[#allocation4] sm:$0xf] }
 0xf1a   :  { %1173 = vst.msk [vmem:[#allocation5 + $0x4] sm:$0xf] %vm1171_vm3, %v1150_v61  ;;  %1147 = vrot.lane.b32.xlu1 %v1131_v62, %s1436_s0 }
 0xf1b   :  { %v1160_v0 = vpop.permute.xlu1 %1159 }
 0xf1c   :  { %1178 = vst.msk [vmem:[#allocation5 + $0x18] sm:$0xf] %vm1171_vm3, %v1160_v0 }
 0xf1d   :  { %v1118_v1 = vld [vmem:[#allocation3 + $0xc] sm:$0xf]  ;;  %v1154_v2 = vpop.permute.xlu0 %1153 }
 0xf1e   :  { %1126 = vst.msk [vmem:[#allocation5 + $0xc] sm:$0xf] %vm284_vm1, %v1118_v1  ;;  %1184 = vrot.lane.b32.xlu1 %v1102_v33, %s1435_s3 }
 0xf1f   :  { %1175 = vst.msk [vmem:[#allocation5 + $0xc] sm:$0xf] %vm1171_vm3, %v1154_v2 }
 0xf21   :  { %v1107_v3 = vpop.permute.xlu0 %1106 }
 0xf22   :  { %1110 = vst.msk [vmem:[#allocation3 + $0x18] sm:$0xf0] %vm404_vm2, %v1107_v3  ;;  %1180 = vst.msk [vmem:[#allocation7 - $0x4] sm:$0xf0] %vm404_vm2, %v1107_v3 }
 0xf23   :  { %1381 = shalt.err (!%p1378_p4)
}
 0xf24   :  { %s1438_s24 = smov 4   ;;  %s1439_s27 = smov [#allocation5]  }
 0xf25   :  { %1216 = dma.vmem_to_hbm [thread:$0]  %s1211_s22, 128, %s1898_s5, [#allocation8], %s1435_s3, %s1435_s3, %s1438_s24   ;;  %v1158_v6 = vpop.permute.xlu0 %1157 }
 0xf26   :  { %1177 = vst.msk [vmem:[#allocation5 + $0x14] sm:$0xf] %vm1171_vm3, %v1158_v6  ;;  %s1198_s28 = sshll.u32 %s1439_s27, 4  ;;  %s1440_s29 = smov [#allocation9]   ;;  %s1199_s28 = int_to_ptr.vmem [resolvable:$true] %s1198_s28 }
 0xf27   :  { %s1222_s30 = sshll.u32 %s1440_s29, 4  ;;  %s1390_s5 = scalar_lea.vmem %s1199_s28, 512  ;;  %s1223_s30 = int_to_ptr.vmem [resolvable:$true] %s1222_s30 }
 0xf28   :  { %p1391_p5 = scmp.ne.s32.totalorder %s1199_s28, %s1390_s5  ;;  %p1395_p6 = scmp.lt.s32.totalorder %s1199_s28, %s1199_s28 }
 0xf29   :  { %v1122_v9 = vld [vmem:[#allocation3 + $0x1c] sm:$0xf]  ;;  %v1162_v11 = vpop.permute.xlu0 %1161  ;;  %p1396_p7 = scmp.lt.s32.totalorder %s1390_s5, %s1390_s5 }
 0xf2a   :  { %1130 = vst.msk [vmem:[#allocation5 + $0x1c] sm:$0xf] %vm284_vm1, %v1122_v9 }
 0xf2b   :  { %1179 = vst.msk [vmem:[#allocation5 + $0x1c] sm:$0xf] %vm1171_vm3, %v1162_v11  ;;  %p1397_p8 = por %p1396_p7, %p1395_p6 }
 0xf2d   :  { %v1189_v14 = vpop.permute.xlu0 %1188  ;;  %p1398_p9 = pnand %p1397_p8, %p1391_p5 }
 0xf2e   :  { %1192 = vst.msk [vmem:[#allocation9] sm:$0xf0] %vm404_vm2, %v1189_v14 }
 0xf8c   :  { %v1148_v16 = vpop.permute.xlu1 %1147 }
 0xf8d   :  { %1172 = vst.msk [vmem:[#allocation5] sm:$0xf] %vm1171_vm3, %v1148_v16 }
 0xf8e   :  { %1401 = shalt.err (!%p1398_p9)
}
 0xf8f   :  { %1204 = dma.vmem_to_hbm [thread:$0]  %s1199_s28, 512, %s1897_s4, [#allocation6], %s1435_s3, %s1435_s3, %s1438_s24  }
 0xf90   :  { %v1185_v18 = vpop.permute.xlu1 %1184  ;;  %s1410_s9 = scalar_lea.vmem %s1223_s30, 128  ;;  %p1415_p11 = scmp.lt.s32.totalorder %s1223_s30, %s1223_s30 }
 0xf91   :  { %1187 = vst.msk [vmem:[#allocation9 - $0x4] sm:$0xf0] %vm404_vm2, %v1185_v18  ;;  %p1411_p10 = scmp.ne.s32.totalorder %s1223_s30, %s1410_s9  ;;  %p1416_p12 = scmp.lt.s32.totalorder %s1410_s9, %s1410_s9 }
 0xf93   :  { %p1417_p13 = por %p1416_p12, %p1415_p11 }
 0xf95   :  { %p1418_p0 = pnand %p1417_p13, %p1411_p10 }
 0xf97   :  { %1421 = shalt.err (!%p1418_p0)
}
 0xf98   :  { %1228 = dma.vmem_to_hbm [thread:$0]  %s1223_s30, 128, %s1899_s6, [#allocation8], %s1435_s3, %s1435_s3, %s1438_s24  }
 0xf99   :  { %1430 = dma.done.wait [#allocation6], 512  }
 0xf9a   :  { %1431 = vsyncadd [#allocation6], 4294966784 }
 0xf9b   :  { %1432 = dma.done.wait [#allocation8], 256  }
 0xf9c   :  { %1433 = vsyncadd [#allocation8], 4294967040 }
 0xf9d   :  { %1238 = vsyncpa [#allocation6], 1 }
 0xf9e   :  { %1239 = vsyncpa [#allocation8], 1 }

</bundles_post_ra>
